<compile_context>
chip_gen: v6e
topology: v6e:2x2x1
jax: 0.10.0
libtpu: 0.0.40
codegen_flags: <defaults>
</compile_context>

<pallas_src>
import functools

import numpy as np
import jax
import jax.numpy as jnp
from jax.experimental import pallas as pl
from jax.experimental.pallas import tpu as pltpu


def scale_pixels(img, data_num_bits):
    """Efficient-VDVAE pixel scaling to [-1, 1]."""
    img = np.floor(img / np.uint8(2 ** (8 - data_num_bits))) * 2 ** (8 - data_num_bits)
    shift = scale = (2 ** 8 - 1) / 2
    return (img - shift) / scale


def _dml_kernel(tgt_ref, lp_ref, means_ref, scales_ref, coeffs_ref, out_ref, *,
                inv_num_classes, log_nc_half, min_pix, max_pix,
                min_log_scale, beta, dist_base, hw_valid, tile_lanes, needs_mask):
    f32 = jnp.float32
    tgt = tgt_ref[0]                                   # (3, 1, T)  float32
    logit_probs = lp_ref[0].astype(f32)                # (n, T)
    means = means_ref[0].astype(f32)                   # (3, n, T)
    scale_logits = scales_ref[0].astype(f32)           # (3, n, T)
    coeffs = jnp.tanh(coeffs_ref[0].astype(f32))       # (3, n, T)

    t0, t1, t2 = tgt[0], tgt[1], tgt[2]                # (1, T) each
    tgts = (t0, t1, t2)
    means_adj = (
        means[0],
        means[1] + coeffs[0] * t0,
        means[2] + coeffs[1] * t0 + coeffs[2] * t1,
    )

    total = jnp.zeros_like(logit_probs)                # sum of per-channel log-probs
    for ch in range(3):
        sl = scale_logits[ch]                          # (n, T) clean leading slice
        if dist_base == "std":
            scales = jnp.maximum(jax.nn.softplus(beta * sl) / beta,
                                 np.float32(np.exp(min_log_scale)))
            inv_stdv = 1.0 / scales
            log_scales = jnp.log(scales)
        elif dist_base == "logstd":
            log_scales = jnp.maximum(sl, np.float32(min_log_scale))
            inv_stdv = jnp.exp(-beta * log_scales)
        else:
            raise ValueError(f"distribution base {dist_base} not known!!")

        t = tgts[ch]
        centered = t - means_adj[ch]
        plus_in = inv_stdv * (centered + inv_num_classes)
        min_in = inv_stdv * (centered - inv_num_classes)
        # sigmoid(x) == exp(x - softplus(x)): reuse the softplus results for both
        # the CDF values and the log-CDFs (saves the sigmoid's extra EUP recips).
        sp_plus = jax.nn.softplus(plus_in)
        sp_min = jax.nn.softplus(min_in)
        log_cdf_plus = plus_in - sp_plus
        log_one_minus_cdf_min = -sp_min
        cdf_delta = jnp.exp(log_cdf_plus) - jnp.exp(min_in - sp_min)
        mid_in = inv_stdv * centered
        log_pdf_mid = mid_in - log_scales - 2.0 * jax.nn.softplus(mid_in)

        t_b = jnp.broadcast_to(t, logit_probs.shape)
        lp = jnp.where(
            t_b == min_pix, log_cdf_plus,
            jnp.where(
                t_b == max_pix, log_one_minus_cdf_min,
                jnp.where(cdf_delta > 1e-5,
                          jnp.log(jnp.maximum(cdf_delta, 1e-12)),
                          log_pdf_mid - log_nc_half)))
        total = total + lp

    def _lse0(x):                                      # logsumexp over mixture axis
        m = jnp.max(x, axis=0, keepdims=True)
        return m + jnp.log(jnp.sum(jnp.exp(x - m), axis=0, keepdims=True))

    # nll = -logsumexp(total + log_softmax(logit_probs))
    #     = lse(logit_probs) - lse(total + logit_probs)   (fused, no (n,T) subtract)
    nll = _lse0(logit_probs) - _lse0(total + logit_probs)   # (1, T)

    if needs_mask:  # zero out contributions from spatial padding lanes
        lane = (jax.lax.broadcasted_iota(jnp.int32, nll.shape, 1)
                + pl.program_id(1) * tile_lanes)
        nll = jnp.where(lane < hw_valid, nll, jnp.float32(0.0))

    # Reduce over the spatial tile in-kernel; emit one partial sum per grid step
    # (broadcast over 128 lanes so the store is a clean unmasked full-row vst).
    out_ref[0, 0] = jnp.broadcast_to(jnp.sum(nll), (1, 128))


def _pick_tile_hw(hw_pad, batch, n_mix, min_grid_steps=4):
    """Largest 128-multiple tile dividing hw_pad, VMEM-capped, keeping >= min_grid_steps."""
    cap_lanes = 4096 if n_mix <= 8 else 2048           # VMEM-safe also on v7x (64 MiB)
    m = hw_pad // 128
    best_any, best_par = 1, None
    for d in range(1, m + 1):
        if d * 128 > cap_lanes:
            break
        if m % d:
            continue
        best_any = d
        if batch * (m // d) >= min_grid_steps:          # keep both v7x TCs busy
            best_par = d
    d = best_par if best_par is not None else best_any
    return d * 128


def disc_mix_logistic_loss(targets, logits, *, data_shape, data_num_bits,
                           num_output_mixtures, min_log_scale, distribution_base,
                           gradient_smoothing_beta, global_batch_size=32,
                           tile_hw=None):
    h, w, c = data_shape
    B, C, H, W = targets.shape
    assert C == 3 and c == 3
    n = num_output_mixtures
    assert logits.shape == (B, (1 + 3 * c) * n, H, W)
    HW = H * W
    num_classes = 2.0 ** data_num_bits - 1.0
    min_pix = float(scale_pixels(0.0, data_num_bits))
    max_pix = float(scale_pixels(255.0, data_num_bits))

    # Targets stay float32 (exact min/max pixel equality checks); logits keep
    # their input dtype (bf16 stays bf16 in HBM) and are cast in-kernel.
    tgt = targets.reshape(B, C, 1, HW).astype(jnp.float32)
    lg = logits.reshape(B, (1 + 3 * c) * n, HW)
    logit_probs = lg[:, :n]                              # (B, n, HW)
    l = lg[:, n:].reshape(B, c, 3 * n, HW)               # (B, 3, 3n, HW)
    means = l[:, :, :n]                                  # (B, 3, n, HW)
    scale_logits = l[:, :, n:2 * n]
    coeff_logits = l[:, :, 2 * n:3 * n]

    # Pad the spatial axis to a multiple of 128 (masked inside the kernel).
    HW_pad = ((HW + 127) // 128) * 128
    if HW_pad != HW:
        pad = HW_pad - HW
        _p = lambda a: jnp.pad(a, [(0, 0)] * (a.ndim - 1) + [(0, pad)])
        tgt, logit_probs, means, scale_logits, coeff_logits = map(
            _p, (tgt, logit_probs, means, scale_logits, coeff_logits))

    if tile_hw is None:
        tile_hw = _pick_tile_hw(HW_pad, B, n)
    assert tile_hw % 128 == 0 and HW_pad % tile_hw == 0
    num_s = HW_pad // tile_hw
    grid = (B, num_s)

    kernel = functools.partial(
        _dml_kernel,
        inv_num_classes=float(1.0 / num_classes),
        log_nc_half=float(np.log(num_classes / 2.0)),
        min_pix=min_pix, max_pix=max_pix,
        min_log_scale=float(min_log_scale),
        beta=float(gradient_smoothing_beta),
        dist_base=distribution_base,
        hw_valid=HW, tile_lanes=tile_hw, needs_mask=(HW_pad != HW))

    partials = pl.pallas_call(
        kernel,
        out_shape=jax.ShapeDtypeStruct((B, num_s, 1, 128), jnp.float32),
        grid=grid,
        in_specs=[
            pl.BlockSpec((1, 3, 1, tile_hw), lambda b, s: (b, 0, 0, s)),   # targets
            pl.BlockSpec((1, n, tile_hw), lambda b, s: (b, 0, s)),         # logit_probs
            pl.BlockSpec((1, 3, n, tile_hw), lambda b, s: (b, 0, 0, s)),   # means
            pl.BlockSpec((1, 3, n, tile_hw), lambda b, s: (b, 0, 0, s)),   # scale logits
            pl.BlockSpec((1, 3, n, tile_hw), lambda b, s: (b, 0, 0, s)),   # coeff logits
        ],
        out_specs=pl.BlockSpec((1, 1, 1, 128), lambda b, s: (b, s, 0, 0)),
        compiler_params=pltpu.CompilerParams(
            dimension_semantics=("parallel", "parallel")),
    )(tgt, logit_probs, means, scale_logits, coeff_logits)

    per_example_loss = jnp.sum(partials[:, :, 0, 0], axis=1)     # (B,)
    avg_per_example_loss = per_example_loss / (HW * c)
    loss = jnp.sum(per_example_loss) / (global_batch_size * h * w * c)
    avg_loss = jnp.sum(avg_per_example_loss) / (global_batch_size * np.log(2))
    return loss, avg_loss


def _reference(targets, logits, cfg):
    """Pure-JAX transcription of the PyTorch forward (for verification)."""
    h, w, c = cfg["data_shape"]
    n = cfg["num_output_mixtures"]
    beta = cfg["gradient_smoothing_beta"]
    B, C, H, W = targets.shape
    num_classes = 2.0 ** cfg["data_num_bits"] - 1.0
    min_pix = scale_pixels(0.0, cfg["data_num_bits"])
    max_pix = scale_pixels(255.0, cfg["data_num_bits"])

    t = targets[:, :, None, :, :]
    logit_probs = logits[:, :n]
    l = logits[:, n:].reshape(B, c, 3 * n, H, W)
    means = l[:, :, :n]
    sl = l[:, :, n:2 * n]
    if cfg["distribution_base"] == "std":
        scales = jnp.maximum(jax.nn.softplus(beta * sl) / beta,
                             np.exp(cfg["min_log_scale"]))
        inv_stdv = 1.0 / scales
        log_scales = jnp.log(scales)
    else:
        log_scales = jnp.maximum(sl, cfg["min_log_scale"])
        inv_stdv = jnp.exp(-beta * log_scales)
    coeffs = jnp.tanh(l[:, :, 2 * n:3 * n])
    mean1 = means[:, 0:1]
    mean2 = means[:, 1:2] + coeffs[:, 0:1] * t[:, 0:1]
    mean3 = means[:, 2:3] + coeffs[:, 1:2] * t[:, 0:1] + coeffs[:, 2:3] * t[:, 1:2]
    means = jnp.concatenate([mean1, mean2, mean3], axis=1)
    centered = t - means
    plus_in = inv_stdv * (centered + 1.0 / num_classes)
    cdf_plus = jax.nn.sigmoid(plus_in)
    min_in = inv_stdv * (centered - 1.0 / num_classes)
    cdf_min = jax.nn.sigmoid(min_in)
    log_cdf_plus = plus_in - jax.nn.softplus(plus_in)
    log_one_minus_cdf_min = -jax.nn.softplus(min_in)
    cdf_delta = cdf_plus - cdf_min
    mid_in = inv_stdv * centered
    log_pdf_mid = mid_in - log_scales - 2.0 * jax.nn.softplus(mid_in)
    bt = jnp.broadcast_to(t, (B, C, n, H, W))
    log_probs = jnp.where(bt == min_pix, log_cdf_plus,
                jnp.where(bt == max_pix, log_one_minus_cdf_min,
                jnp.where(cdf_delta > 1e-5,
                          jnp.log(jnp.maximum(cdf_delta, 1e-12)),
                          log_pdf_mid - np.log(num_classes / 2))))
    log_probs = jnp.sum(log_probs, axis=1) + jax.nn.log_softmax(logit_probs, axis=1)
    nll = -jax.scipy.special.logsumexp(log_probs, axis=1)
    per_example = jnp.sum(nll, axis=(1, 2))
    avg = per_example / (H * W * c)
    loss = jnp.sum(per_example) / (cfg["global_batch_size"] * h * w * c)
    avg_loss = jnp.sum(avg) / (cfg["global_batch_size"] * np.log(2))
    return loss, avg_loss


def _run_case(key, B, H, W, n, dist_base):
    cfg = dict(data_shape=(H, W, 3), data_num_bits=8, num_output_mixtures=n,
               min_log_scale=-7.0, distribution_base=dist_base,
               gradient_smoothing_beta=float(np.log(2.0)),
               global_batch_size=32)
    k1, k2 = jax.random.split(key)
    pix = np.array(jax.random.randint(k1, (B, 3, H, W), 0, 256))
    targets = jnp.asarray(scale_pixels(pix.astype(np.float64), 8), dtype=jnp.float32)
    # distribution.logits has 10*n channels: n mixture logits + 3 (RGB) * 3n params
    logits = jax.random.normal(k2, (B, 10 * n, H, W), dtype=jnp.float32)

    loss, avg_loss = disc_mix_logistic_loss(targets, logits, **cfg)
    jax.block_until_ready((loss, avg_loss))

    ref_loss, ref_avg = _reference(targets, logits, cfg)
    np.testing.assert_allclose(np.array(loss), np.array(ref_loss), rtol=5e-5, atol=5e-5)
    np.testing.assert_allclose(np.array(avg_loss), np.array(ref_avg), rtol=5e-5, atol=5e-5)


if __name__ == "__main__":
    key = jax.random.PRNGKey(0)
    k_a, k_b = jax.random.split(key)
    # main case: HW multiple of 128 (no padding path)
    _run_case(k_a, B=2, H=16, W=16, n=4, dist_base="std")
    # padded case: HW = 100 -> padded to 128, exercises the in-kernel lane mask
    _run_case(k_b, B=2, H=10, W=10, n=4, dist_base="std")
    print("KERNEL_OK")
</pallas_src>

<mosaic_0001>
module attributes {stable_mosaic.version = 11 : i64} {
  func.func @_dml_kernel(%arg0: i32, %arg1: i32, %arg2: memref<1x3x1x128xf32, #tpu.memory_space<vmem>>, %arg3: memref<1x4x128xf32, #tpu.memory_space<vmem>>, %arg4: memref<1x3x4x128xf32, #tpu.memory_space<vmem>>, %arg5: memref<1x3x4x128xf32, #tpu.memory_space<vmem>>, %arg6: memref<1x3x4x128xf32, #tpu.memory_space<vmem>>, %arg7: memref<1x1x1x128xf32, #tpu.memory_space<vmem>>) attributes {dimension_semantics = [#tpu.dimension_semantics<parallel>, #tpu.dimension_semantics<parallel>], iteration_bounds = array<i64: 2, 2>, scalar_prefetch = 0 : i64, scratch_operands = 0 : i64, tpu.core_type = #tpu.core_type<tc>, window_params = [{transform_indices = @transform_0, window_bounds = array<i64: 1, 3, 1, 128>}, {transform_indices = @transform_1, window_bounds = array<i64: 1, 4, 128>}, {transform_indices = @transform_2, window_bounds = array<i64: 1, 3, 4, 128>}, {transform_indices = @transform_3, window_bounds = array<i64: 1, 3, 4, 128>}, {transform_indices = @transform_4, window_bounds = array<i64: 1, 3, 4, 128>}, {transform_indices = @transform_5, window_bounds = array<i64: 1, 1, 1, 128>}]} {
    %c0 = arith.constant 0 : index
    %c0_0 = arith.constant 0 : index
    %c0_1 = arith.constant 0 : index
    %c0_2 = arith.constant 0 : index
    %0 = vector.load %arg2[%c0, %c0_0, %c0_1, %c0_2] : memref<1x3x1x128xf32, #tpu.memory_space<vmem>>, vector<1x3x1x128xf32>
    %1 = vector.shape_cast %0 : vector<1x3x1x128xf32> to vector<3x1x128xf32>
    %c0_3 = arith.constant 0 : index
    %c0_4 = arith.constant 0 : index
    %c0_5 = arith.constant 0 : index
    %2 = vector.load %arg3[%c0_3, %c0_4, %c0_5] : memref<1x4x128xf32, #tpu.memory_space<vmem>>, vector<1x4x128xf32>
    %3 = vector.shape_cast %2 : vector<1x4x128xf32> to vector<4x128xf32>
    %c0_6 = arith.constant 0 : index
    %c0_7 = arith.constant 0 : index
    %c0_8 = arith.constant 0 : index
    %c0_9 = arith.constant 0 : index
    %4 = vector.load %arg4[%c0_6, %c0_7, %c0_8, %c0_9] : memref<1x3x4x128xf32, #tpu.memory_space<vmem>>, vector<1x3x4x128xf32>
    %5 = vector.shape_cast %4 : vector<1x3x4x128xf32> to vector<3x4x128xf32>
    %c0_10 = arith.constant 0 : index
    %c0_11 = arith.constant 0 : index
    %c0_12 = arith.constant 0 : index
    %c0_13 = arith.constant 0 : index
    %6 = vector.load %arg5[%c0_10, %c0_11, %c0_12, %c0_13] : memref<1x3x4x128xf32, #tpu.memory_space<vmem>>, vector<1x3x4x128xf32>
    %7 = vector.shape_cast %6 : vector<1x3x4x128xf32> to vector<3x4x128xf32>
    %c0_14 = arith.constant 0 : index
    %c0_15 = arith.constant 0 : index
    %c0_16 = arith.constant 0 : index
    %c0_17 = arith.constant 0 : index
    %8 = vector.load %arg6[%c0_14, %c0_15, %c0_16, %c0_17] : memref<1x3x4x128xf32, #tpu.memory_space<vmem>>, vector<1x3x4x128xf32>
    %9 = vector.shape_cast %8 : vector<1x3x4x128xf32> to vector<3x4x128xf32>
    %10 = math.tanh %9 : vector<3x4x128xf32>
    %11 = vector.extract_strided_slice %1 {offsets = [0, 0, 0], sizes = [1, 1, 128], strides = [1, 1, 1]} : vector<3x1x128xf32> to vector<1x1x128xf32>
    %12 = vector.shape_cast %11 : vector<1x1x128xf32> to vector<1x128xf32>
    %13 = vector.extract_strided_slice %1 {offsets = [1, 0, 0], sizes = [1, 1, 128], strides = [1, 1, 1]} : vector<3x1x128xf32> to vector<1x1x128xf32>
    %14 = vector.shape_cast %13 : vector<1x1x128xf32> to vector<1x128xf32>
    %15 = vector.extract_strided_slice %1 {offsets = [2, 0, 0], sizes = [1, 1, 128], strides = [1, 1, 1]} : vector<3x1x128xf32> to vector<1x1x128xf32>
    %16 = vector.shape_cast %15 : vector<1x1x128xf32> to vector<1x128xf32>
    %17 = vector.extract_strided_slice %5 {offsets = [0, 0, 0], sizes = [1, 4, 128], strides = [1, 1, 1]} : vector<3x4x128xf32> to vector<1x4x128xf32>
    %18 = vector.shape_cast %17 : vector<1x4x128xf32> to vector<4x128xf32>
    %19 = vector.extract_strided_slice %5 {offsets = [1, 0, 0], sizes = [1, 4, 128], strides = [1, 1, 1]} : vector<3x4x128xf32> to vector<1x4x128xf32>
    %20 = vector.shape_cast %19 : vector<1x4x128xf32> to vector<4x128xf32>
    %21 = vector.extract_strided_slice %10 {offsets = [0, 0, 0], sizes = [1, 4, 128], strides = [1, 1, 1]} : vector<3x4x128xf32> to vector<1x4x128xf32>
    %22 = vector.shape_cast %21 : vector<1x4x128xf32> to vector<4x128xf32>
    %23 = vector.broadcast %12 : vector<1x128xf32> to vector<4x128xf32>
    %24 = arith.mulf %22, %23 : vector<4x128xf32>
    %25 = arith.addf %20, %24 : vector<4x128xf32>
    %26 = vector.extract_strided_slice %5 {offsets = [2, 0, 0], sizes = [1, 4, 128], strides = [1, 1, 1]} : vector<3x4x128xf32> to vector<1x4x128xf32>
    %27 = vector.shape_cast %26 : vector<1x4x128xf32> to vector<4x128xf32>
    %28 = vector.extract_strided_slice %10 {offsets = [1, 0, 0], sizes = [1, 4, 128], strides = [1, 1, 1]} : vector<3x4x128xf32> to vector<1x4x128xf32>
    %29 = vector.shape_cast %28 : vector<1x4x128xf32> to vector<4x128xf32>
    %30 = vector.broadcast %12 : vector<1x128xf32> to vector<4x128xf32>
    %31 = arith.mulf %29, %30 : vector<4x128xf32>
    %32 = arith.addf %27, %31 : vector<4x128xf32>
    %33 = vector.extract_strided_slice %10 {offsets = [2, 0, 0], sizes = [1, 4, 128], strides = [1, 1, 1]} : vector<3x4x128xf32> to vector<1x4x128xf32>
    %34 = vector.shape_cast %33 : vector<1x4x128xf32> to vector<4x128xf32>
    %35 = vector.broadcast %14 : vector<1x128xf32> to vector<4x128xf32>
    %36 = arith.mulf %34, %35 : vector<4x128xf32>
    %37 = arith.addf %32, %36 : vector<4x128xf32>
    %cst = arith.constant 0.000000e+00 : f32
    %38 = vector.broadcast %cst : f32 to vector<4x128xf32>
    %39 = vector.extract_strided_slice %7 {offsets = [0, 0, 0], sizes = [1, 4, 128], strides = [1, 1, 1]} : vector<3x4x128xf32> to vector<1x4x128xf32>
    %40 = vector.shape_cast %39 : vector<1x4x128xf32> to vector<4x128xf32>
    %cst_18 = arith.constant 0.693147182 : f32
    %41 = vector.broadcast %cst_18 : f32 to vector<4x128xf32>
    %42 = arith.mulf %41, %40 : vector<4x128xf32>
    %cst_19 = arith.constant 0.000000e+00 : f32
    %43 = vector.broadcast %cst_19 : f32 to vector<4x128xf32>
    %44 = arith.maximumf %42, %43 : vector<4x128xf32>
    %45 = vector.broadcast %cst_19 : f32 to vector<4x128xf32>
    %46 = arith.subf %42, %45 : vector<4x128xf32>
    %47 = arith.cmpf one, %46, %46 : vector<4x128xf32>
    %48 = vector.broadcast %cst_19 : f32 to vector<4x128xf32>
    %49 = arith.addf %42, %48 : vector<4x128xf32>
    %50 = math.absf %46 : vector<4x128xf32>
    %cst_20 = arith.constant 0.000000e+00 : f32
    %51 = vector.broadcast %cst_20 : f32 to vector<4x128xf32>
    %52 = arith.subf %51, %50 : vector<4x128xf32>
    %53 = math.exp %52 : vector<4x128xf32>
    %54 = math.log1p %53 : vector<4x128xf32>
    %55 = arith.addf %44, %54 : vector<4x128xf32>
    %56 = arith.select %47, %49, %55 : vector<4x128xi1>, vector<4x128xf32>
    %cst_21 = arith.constant 0.693147182 : f32
    %57 = vector.broadcast %cst_21 : f32 to vector<4x128xf32>
    %58 = arith.divf %56, %57 : vector<4x128xf32>
    %cst_22 = arith.constant 9.118820e-04 : f32
    %59 = vector.broadcast %cst_22 : f32 to vector<4x128xf32>
    %60 = arith.maximumf %58, %59 : vector<4x128xf32>
    %cst_23 = arith.constant 1.000000e+00 : f32
    %61 = vector.broadcast %cst_23 : f32 to vector<4x128xf32>
    %62 = arith.divf %61, %60 : vector<4x128xf32>
    %63 = math.log %60 : vector<4x128xf32>
    %64 = vector.broadcast %12 : vector<1x128xf32> to vector<4x128xf32>
    %65 = arith.subf %64, %18 : vector<4x128xf32>
    %cst_24 = arith.constant 0.00392156886 : f32
    %66 = vector.broadcast %cst_24 : f32 to vector<4x128xf32>
    %67 = arith.addf %65, %66 : vector<4x128xf32>
    %68 = arith.mulf %62, %67 : vector<4x128xf32>
    %cst_25 = arith.constant 0.00392156886 : f32
    %69 = vector.broadcast %cst_25 : f32 to vector<4x128xf32>
    %70 = arith.subf %65, %69 : vector<4x128xf32>
    %71 = arith.mulf %62, %70 : vector<4x128xf32>
    %cst_26 = arith.constant 0.000000e+00 : f32
    %72 = vector.broadcast %cst_26 : f32 to vector<4x128xf32>
    %73 = arith.maximumf %68, %72 : vector<4x128xf32>
    %74 = vector.broadcast %cst_26 : f32 to vector<4x128xf32>
    %75 = arith.subf %68, %74 : vector<4x128xf32>
    %76 = arith.cmpf one, %75, %75 : vector<4x128xf32>
    %77 = vector.broadcast %cst_26 : f32 to vector<4x128xf32>
    %78 = arith.addf %68, %77 : vector<4x128xf32>
    %79 = math.absf %75 : vector<4x128xf32>
    %cst_27 = arith.constant 0.000000e+00 : f32
    %80 = vector.broadcast %cst_27 : f32 to vector<4x128xf32>
    %81 = arith.subf %80, %79 : vector<4x128xf32>
    %82 = math.exp %81 : vector<4x128xf32>
    %83 = math.log1p %82 : vector<4x128xf32>
    %84 = arith.addf %73, %83 : vector<4x128xf32>
    %85 = arith.select %76, %78, %84 : vector<4x128xi1>, vector<4x128xf32>
    %cst_28 = arith.constant 0.000000e+00 : f32
    %86 = vector.broadcast %cst_28 : f32 to vector<4x128xf32>
    %87 = arith.maximumf %71, %86 : vector<4x128xf32>
    %88 = vector.broadcast %cst_28 : f32 to vector<4x128xf32>
    %89 = arith.subf %71, %88 : vector<4x128xf32>
    %90 = arith.cmpf one, %89, %89 : vector<4x128xf32>
    %91 = vector.broadcast %cst_28 : f32 to vector<4x128xf32>
    %92 = arith.addf %71, %91 : vector<4x128xf32>
    %93 = math.absf %89 : vector<4x128xf32>
    %cst_29 = arith.constant 0.000000e+00 : f32
    %94 = vector.broadcast %cst_29 : f32 to vector<4x128xf32>
    %95 = arith.subf %94, %93 : vector<4x128xf32>
    %96 = math.exp %95 : vector<4x128xf32>
    %97 = math.log1p %96 : vector<4x128xf32>
    %98 = arith.addf %87, %97 : vector<4x128xf32>
    %99 = arith.select %90, %92, %98 : vector<4x128xi1>, vector<4x128xf32>
    %100 = arith.subf %68, %85 : vector<4x128xf32>
    %cst_30 = arith.constant 0.000000e+00 : f32
    %101 = vector.broadcast %cst_30 : f32 to vector<4x128xf32>
    %102 = arith.subf %101, %99 : vector<4x128xf32>
    %103 = math.exp %100 : vector<4x128xf32>
    %104 = arith.subf %71, %99 : vector<4x128xf32>
    %105 = math.exp %104 : vector<4x128xf32>
    %106 = arith.subf %103, %105 : vector<4x128xf32>
    %107 = arith.mulf %62, %65 : vector<4x128xf32>
    %108 = arith.subf %107, %63 : vector<4x128xf32>
    %cst_31 = arith.constant 0.000000e+00 : f32
    %109 = vector.broadcast %cst_31 : f32 to vector<4x128xf32>
    %110 = arith.maximumf %107, %109 : vector<4x128xf32>
    %111 = vector.broadcast %cst_31 : f32 to vector<4x128xf32>
    %112 = arith.subf %107, %111 : vector<4x128xf32>
    %113 = arith.cmpf one, %112, %112 : vector<4x128xf32>
    %114 = vector.broadcast %cst_31 : f32 to vector<4x128xf32>
    %115 = arith.addf %107, %114 : vector<4x128xf32>
    %116 = math.absf %112 : vector<4x128xf32>
    %cst_32 = arith.constant 0.000000e+00 : f32
    %117 = vector.broadcast %cst_32 : f32 to vector<4x128xf32>
    %118 = arith.subf %117, %116 : vector<4x128xf32>
    %119 = math.exp %118 : vector<4x128xf32>
    %120 = math.log1p %119 : vector<4x128xf32>
    %121 = arith.addf %110, %120 : vector<4x128xf32>
    %122 = arith.select %113, %115, %121 : vector<4x128xi1>, vector<4x128xf32>
    %cst_33 = arith.constant 2.000000e+00 : f32
    %123 = vector.broadcast %cst_33 : f32 to vector<4x128xf32>
    %124 = arith.mulf %123, %122 : vector<4x128xf32>
    %125 = arith.subf %108, %124 : vector<4x128xf32>
    %126 = vector.shape_cast %12 : vector<1x128xf32> to vector<1x128xf32>
    %127 = vector.broadcast %126 : vector<1x128xf32> to vector<4x128xf32>
    %cst_34 = arith.constant -1.000000e+00 : f32
    %128 = vector.broadcast %cst_34 : f32 to vector<4x128xf32>
    %129 = arith.cmpf oeq, %127, %128 : vector<4x128xf32>
    %cst_35 = arith.constant 1.000000e+00 : f32
    %130 = vector.broadcast %cst_35 : f32 to vector<4x128xf32>
    %131 = arith.cmpf oeq, %127, %130 : vector<4x128xf32>
    %cst_36 = arith.constant 9.99999974E-6 : f32
    %132 = vector.broadcast %cst_36 : f32 to vector<4x128xf32>
    %133 = arith.cmpf ogt, %106, %132 : vector<4x128xf32>
    %cst_37 = arith.constant 9.99999996E-13 : f32
    %134 = vector.broadcast %cst_37 : f32 to vector<4x128xf32>
    %135 = arith.maximumf %106, %134 : vector<4x128xf32>
    %136 = math.log %135 : vector<4x128xf32>
    %cst_38 = arith.constant 4.8481164 : f32
    %137 = vector.broadcast %cst_38 : f32 to vector<4x128xf32>
    %138 = arith.subf %125, %137 : vector<4x128xf32>
    %139 = arith.select %133, %136, %138 : vector<4x128xi1>, vector<4x128xf32>
    %140 = arith.select %131, %102, %139 : vector<4x128xi1>, vector<4x128xf32>
    %141 = arith.select %129, %100, %140 : vector<4x128xi1>, vector<4x128xf32>
    %142 = arith.addf %38, %141 : vector<4x128xf32>
    %143 = vector.extract_strided_slice %7 {offsets = [1, 0, 0], sizes = [1, 4, 128], strides = [1, 1, 1]} : vector<3x4x128xf32> to vector<1x4x128xf32>
    %144 = vector.shape_cast %143 : vector<1x4x128xf32> to vector<4x128xf32>
    %cst_39 = arith.constant 0.693147182 : f32
    %145 = vector.broadcast %cst_39 : f32 to vector<4x128xf32>
    %146 = arith.mulf %145, %144 : vector<4x128xf32>
    %cst_40 = arith.constant 0.000000e+00 : f32
    %147 = vector.broadcast %cst_40 : f32 to vector<4x128xf32>
    %148 = arith.maximumf %146, %147 : vector<4x128xf32>
    %149 = vector.broadcast %cst_40 : f32 to vector<4x128xf32>
    %150 = arith.subf %146, %149 : vector<4x128xf32>
    %151 = arith.cmpf one, %150, %150 : vector<4x128xf32>
    %152 = vector.broadcast %cst_40 : f32 to vector<4x128xf32>
    %153 = arith.addf %146, %152 : vector<4x128xf32>
    %154 = math.absf %150 : vector<4x128xf32>
    %cst_41 = arith.constant 0.000000e+00 : f32
    %155 = vector.broadcast %cst_41 : f32 to vector<4x128xf32>
    %156 = arith.subf %155, %154 : vector<4x128xf32>
    %157 = math.exp %156 : vector<4x128xf32>
    %158 = math.log1p %157 : vector<4x128xf32>
    %159 = arith.addf %148, %158 : vector<4x128xf32>
    %160 = arith.select %151, %153, %159 : vector<4x128xi1>, vector<4x128xf32>
    %cst_42 = arith.constant 0.693147182 : f32
    %161 = vector.broadcast %cst_42 : f32 to vector<4x128xf32>
    %162 = arith.divf %160, %161 : vector<4x128xf32>
    %cst_43 = arith.constant 9.118820e-04 : f32
    %163 = vector.broadcast %cst_43 : f32 to vector<4x128xf32>
    %164 = arith.maximumf %162, %163 : vector<4x128xf32>
    %cst_44 = arith.constant 1.000000e+00 : f32
    %165 = vector.broadcast %cst_44 : f32 to vector<4x128xf32>
    %166 = arith.divf %165, %164 : vector<4x128xf32>
    %167 = math.log %164 : vector<4x128xf32>
    %168 = vector.broadcast %14 : vector<1x128xf32> to vector<4x128xf32>
    %169 = arith.subf %168, %25 : vector<4x128xf32>
    %cst_45 = arith.constant 0.00392156886 : f32
    %170 = vector.broadcast %cst_45 : f32 to vector<4x128xf32>
    %171 = arith.addf %169, %170 : vector<4x128xf32>
    %172 = arith.mulf %166, %171 : vector<4x128xf32>
    %cst_46 = arith.constant 0.00392156886 : f32
    %173 = vector.broadcast %cst_46 : f32 to vector<4x128xf32>
    %174 = arith.subf %169, %173 : vector<4x128xf32>
    %175 = arith.mulf %166, %174 : vector<4x128xf32>
    %cst_47 = arith.constant 0.000000e+00 : f32
    %176 = vector.broadcast %cst_47 : f32 to vector<4x128xf32>
    %177 = arith.maximumf %172, %176 : vector<4x128xf32>
    %178 = vector.broadcast %cst_47 : f32 to vector<4x128xf32>
    %179 = arith.subf %172, %178 : vector<4x128xf32>
    %180 = arith.cmpf one, %179, %179 : vector<4x128xf32>
    %181 = vector.broadcast %cst_47 : f32 to vector<4x128xf32>
    %182 = arith.addf %172, %181 : vector<4x128xf32>
    %183 = math.absf %179 : vector<4x128xf32>
    %cst_48 = arith.constant 0.000000e+00 : f32
    %184 = vector.broadcast %cst_48 : f32 to vector<4x128xf32>
    %185 = arith.subf %184, %183 : vector<4x128xf32>
    %186 = math.exp %185 : vector<4x128xf32>
    %187 = math.log1p %186 : vector<4x128xf32>
    %188 = arith.addf %177, %187 : vector<4x128xf32>
    %189 = arith.select %180, %182, %188 : vector<4x128xi1>, vector<4x128xf32>
    %cst_49 = arith.constant 0.000000e+00 : f32
    %190 = vector.broadcast %cst_49 : f32 to vector<4x128xf32>
    %191 = arith.maximumf %175, %190 : vector<4x128xf32>
    %192 = vector.broadcast %cst_49 : f32 to vector<4x128xf32>
    %193 = arith.subf %175, %192 : vector<4x128xf32>
    %194 = arith.cmpf one, %193, %193 : vector<4x128xf32>
    %195 = vector.broadcast %cst_49 : f32 to vector<4x128xf32>
    %196 = arith.addf %175, %195 : vector<4x128xf32>
    %197 = math.absf %193 : vector<4x128xf32>
    %cst_50 = arith.constant 0.000000e+00 : f32
    %198 = vector.broadcast %cst_50 : f32 to vector<4x128xf32>
    %199 = arith.subf %198, %197 : vector<4x128xf32>
    %200 = math.exp %199 : vector<4x128xf32>
    %201 = math.log1p %200 : vector<4x128xf32>
    %202 = arith.addf %191, %201 : vector<4x128xf32>
    %203 = arith.select %194, %196, %202 : vector<4x128xi1>, vector<4x128xf32>
    %204 = arith.subf %172, %189 : vector<4x128xf32>
    %cst_51 = arith.constant 0.000000e+00 : f32
    %205 = vector.broadcast %cst_51 : f32 to vector<4x128xf32>
    %206 = arith.subf %205, %203 : vector<4x128xf32>
    %207 = math.exp %204 : vector<4x128xf32>
    %208 = arith.subf %175, %203 : vector<4x128xf32>
    %209 = math.exp %208 : vector<4x128xf32>
    %210 = arith.subf %207, %209 : vector<4x128xf32>
    %211 = arith.mulf %166, %169 : vector<4x128xf32>
    %212 = arith.subf %211, %167 : vector<4x128xf32>
    %cst_52 = arith.constant 0.000000e+00 : f32
    %213 = vector.broadcast %cst_52 : f32 to vector<4x128xf32>
    %214 = arith.maximumf %211, %213 : vector<4x128xf32>
    %215 = vector.broadcast %cst_52 : f32 to vector<4x128xf32>
    %216 = arith.subf %211, %215 : vector<4x128xf32>
    %217 = arith.cmpf one, %216, %216 : vector<4x128xf32>
    %218 = vector.broadcast %cst_52 : f32 to vector<4x128xf32>
    %219 = arith.addf %211, %218 : vector<4x128xf32>
    %220 = math.absf %216 : vector<4x128xf32>
    %cst_53 = arith.constant 0.000000e+00 : f32
    %221 = vector.broadcast %cst_53 : f32 to vector<4x128xf32>
    %222 = arith.subf %221, %220 : vector<4x128xf32>
    %223 = math.exp %222 : vector<4x128xf32>
    %224 = math.log1p %223 : vector<4x128xf32>
    %225 = arith.addf %214, %224 : vector<4x128xf32>
    %226 = arith.select %217, %219, %225 : vector<4x128xi1>, vector<4x128xf32>
    %cst_54 = arith.constant 2.000000e+00 : f32
    %227 = vector.broadcast %cst_54 : f32 to vector<4x128xf32>
    %228 = arith.mulf %227, %226 : vector<4x128xf32>
    %229 = arith.subf %212, %228 : vector<4x128xf32>
    %230 = vector.shape_cast %14 : vector<1x128xf32> to vector<1x128xf32>
    %231 = vector.broadcast %230 : vector<1x128xf32> to vector<4x128xf32>
    %cst_55 = arith.constant -1.000000e+00 : f32
    %232 = vector.broadcast %cst_55 : f32 to vector<4x128xf32>
    %233 = arith.cmpf oeq, %231, %232 : vector<4x128xf32>
    %cst_56 = arith.constant 1.000000e+00 : f32
    %234 = vector.broadcast %cst_56 : f32 to vector<4x128xf32>
    %235 = arith.cmpf oeq, %231, %234 : vector<4x128xf32>
    %cst_57 = arith.constant 9.99999974E-6 : f32
    %236 = vector.broadcast %cst_57 : f32 to vector<4x128xf32>
    %237 = arith.cmpf ogt, %210, %236 : vector<4x128xf32>
    %cst_58 = arith.constant 9.99999996E-13 : f32
    %238 = vector.broadcast %cst_58 : f32 to vector<4x128xf32>
    %239 = arith.maximumf %210, %238 : vector<4x128xf32>
    %240 = math.log %239 : vector<4x128xf32>
    %cst_59 = arith.constant 4.8481164 : f32
    %241 = vector.broadcast %cst_59 : f32 to vector<4x128xf32>
    %242 = arith.subf %229, %241 : vector<4x128xf32>
    %243 = arith.select %237, %240, %242 : vector<4x128xi1>, vector<4x128xf32>
    %244 = arith.select %235, %206, %243 : vector<4x128xi1>, vector<4x128xf32>
    %245 = arith.select %233, %204, %244 : vector<4x128xi1>, vector<4x128xf32>
    %246 = arith.addf %142, %245 : vector<4x128xf32>
    %247 = vector.extract_strided_slice %7 {offsets = [2, 0, 0], sizes = [1, 4, 128], strides = [1, 1, 1]} : vector<3x4x128xf32> to vector<1x4x128xf32>
    %248 = vector.shape_cast %247 : vector<1x4x128xf32> to vector<4x128xf32>
    %cst_60 = arith.constant 0.693147182 : f32
    %249 = vector.broadcast %cst_60 : f32 to vector<4x128xf32>
    %250 = arith.mulf %249, %248 : vector<4x128xf32>
    %cst_61 = arith.constant 0.000000e+00 : f32
    %251 = vector.broadcast %cst_61 : f32 to vector<4x128xf32>
    %252 = arith.maximumf %250, %251 : vector<4x128xf32>
    %253 = vector.broadcast %cst_61 : f32 to vector<4x128xf32>
    %254 = arith.subf %250, %253 : vector<4x128xf32>
    %255 = arith.cmpf one, %254, %254 : vector<4x128xf32>
    %256 = vector.broadcast %cst_61 : f32 to vector<4x128xf32>
    %257 = arith.addf %250, %256 : vector<4x128xf32>
    %258 = math.absf %254 : vector<4x128xf32>
    %cst_62 = arith.constant 0.000000e+00 : f32
    %259 = vector.broadcast %cst_62 : f32 to vector<4x128xf32>
    %260 = arith.subf %259, %258 : vector<4x128xf32>
    %261 = math.exp %260 : vector<4x128xf32>
    %262 = math.log1p %261 : vector<4x128xf32>
    %263 = arith.addf %252, %262 : vector<4x128xf32>
    %264 = arith.select %255, %257, %263 : vector<4x128xi1>, vector<4x128xf32>
    %cst_63 = arith.constant 0.693147182 : f32
    %265 = vector.broadcast %cst_63 : f32 to vector<4x128xf32>
    %266 = arith.divf %264, %265 : vector<4x128xf32>
    %cst_64 = arith.constant 9.118820e-04 : f32
    %267 = vector.broadcast %cst_64 : f32 to vector<4x128xf32>
    %268 = arith.maximumf %266, %267 : vector<4x128xf32>
    %cst_65 = arith.constant 1.000000e+00 : f32
    %269 = vector.broadcast %cst_65 : f32 to vector<4x128xf32>
    %270 = arith.divf %269, %268 : vector<4x128xf32>
    %271 = math.log %268 : vector<4x128xf32>
    %272 = vector.broadcast %16 : vector<1x128xf32> to vector<4x128xf32>
    %273 = arith.subf %272, %37 : vector<4x128xf32>
    %cst_66 = arith.constant 0.00392156886 : f32
    %274 = vector.broadcast %cst_66 : f32 to vector<4x128xf32>
    %275 = arith.addf %273, %274 : vector<4x128xf32>
    %276 = arith.mulf %270, %275 : vector<4x128xf32>
    %cst_67 = arith.constant 0.00392156886 : f32
    %277 = vector.broadcast %cst_67 : f32 to vector<4x128xf32>
    %278 = arith.subf %273, %277 : vector<4x128xf32>
    %279 = arith.mulf %270, %278 : vector<4x128xf32>
    %cst_68 = arith.constant 0.000000e+00 : f32
    %280 = vector.broadcast %cst_68 : f32 to vector<4x128xf32>
    %281 = arith.maximumf %276, %280 : vector<4x128xf32>
    %282 = vector.broadcast %cst_68 : f32 to vector<4x128xf32>
    %283 = arith.subf %276, %282 : vector<4x128xf32>
    %284 = arith.cmpf one, %283, %283 : vector<4x128xf32>
    %285 = vector.broadcast %cst_68 : f32 to vector<4x128xf32>
    %286 = arith.addf %276, %285 : vector<4x128xf32>
    %287 = math.absf %283 : vector<4x128xf32>
    %cst_69 = arith.constant 0.000000e+00 : f32
    %288 = vector.broadcast %cst_69 : f32 to vector<4x128xf32>
    %289 = arith.subf %288, %287 : vector<4x128xf32>
    %290 = math.exp %289 : vector<4x128xf32>
    %291 = math.log1p %290 : vector<4x128xf32>
    %292 = arith.addf %281, %291 : vector<4x128xf32>
    %293 = arith.select %284, %286, %292 : vector<4x128xi1>, vector<4x128xf32>
    %cst_70 = arith.constant 0.000000e+00 : f32
    %294 = vector.broadcast %cst_70 : f32 to vector<4x128xf32>
    %295 = arith.maximumf %279, %294 : vector<4x128xf32>
    %296 = vector.broadcast %cst_70 : f32 to vector<4x128xf32>
    %297 = arith.subf %279, %296 : vector<4x128xf32>
    %298 = arith.cmpf one, %297, %297 : vector<4x128xf32>
    %299 = vector.broadcast %cst_70 : f32 to vector<4x128xf32>
    %300 = arith.addf %279, %299 : vector<4x128xf32>
    %301 = math.absf %297 : vector<4x128xf32>
    %cst_71 = arith.constant 0.000000e+00 : f32
    %302 = vector.broadcast %cst_71 : f32 to vector<4x128xf32>
    %303 = arith.subf %302, %301 : vector<4x128xf32>
    %304 = math.exp %303 : vector<4x128xf32>
    %305 = math.log1p %304 : vector<4x128xf32>
    %306 = arith.addf %295, %305 : vector<4x128xf32>
    %307 = arith.select %298, %300, %306 : vector<4x128xi1>, vector<4x128xf32>
    %308 = arith.subf %276, %293 : vector<4x128xf32>
    %cst_72 = arith.constant 0.000000e+00 : f32
    %309 = vector.broadcast %cst_72 : f32 to vector<4x128xf32>
    %310 = arith.subf %309, %307 : vector<4x128xf32>
    %311 = math.exp %308 : vector<4x128xf32>
    %312 = arith.subf %279, %307 : vector<4x128xf32>
    %313 = math.exp %312 : vector<4x128xf32>
    %314 = arith.subf %311, %313 : vector<4x128xf32>
    %315 = arith.mulf %270, %273 : vector<4x128xf32>
    %316 = arith.subf %315, %271 : vector<4x128xf32>
    %cst_73 = arith.constant 0.000000e+00 : f32
    %317 = vector.broadcast %cst_73 : f32 to vector<4x128xf32>
    %318 = arith.maximumf %315, %317 : vector<4x128xf32>
    %319 = vector.broadcast %cst_73 : f32 to vector<4x128xf32>
    %320 = arith.subf %315, %319 : vector<4x128xf32>
    %321 = arith.cmpf one, %320, %320 : vector<4x128xf32>
    %322 = vector.broadcast %cst_73 : f32 to vector<4x128xf32>
    %323 = arith.addf %315, %322 : vector<4x128xf32>
    %324 = math.absf %320 : vector<4x128xf32>
    %cst_74 = arith.constant 0.000000e+00 : f32
    %325 = vector.broadcast %cst_74 : f32 to vector<4x128xf32>
    %326 = arith.subf %325, %324 : vector<4x128xf32>
    %327 = math.exp %326 : vector<4x128xf32>
    %328 = math.log1p %327 : vector<4x128xf32>
    %329 = arith.addf %318, %328 : vector<4x128xf32>
    %330 = arith.select %321, %323, %329 : vector<4x128xi1>, vector<4x128xf32>
    %cst_75 = arith.constant 2.000000e+00 : f32
    %331 = vector.broadcast %cst_75 : f32 to vector<4x128xf32>
    %332 = arith.mulf %331, %330 : vector<4x128xf32>
    %333 = arith.subf %316, %332 : vector<4x128xf32>
    %334 = vector.shape_cast %16 : vector<1x128xf32> to vector<1x128xf32>
    %335 = vector.broadcast %334 : vector<1x128xf32> to vector<4x128xf32>
    %cst_76 = arith.constant -1.000000e+00 : f32
    %336 = vector.broadcast %cst_76 : f32 to vector<4x128xf32>
    %337 = arith.cmpf oeq, %335, %336 : vector<4x128xf32>
    %cst_77 = arith.constant 1.000000e+00 : f32
    %338 = vector.broadcast %cst_77 : f32 to vector<4x128xf32>
    %339 = arith.cmpf oeq, %335, %338 : vector<4x128xf32>
    %cst_78 = arith.constant 9.99999974E-6 : f32
    %340 = vector.broadcast %cst_78 : f32 to vector<4x128xf32>
    %341 = arith.cmpf ogt, %314, %340 : vector<4x128xf32>
    %cst_79 = arith.constant 9.99999996E-13 : f32
    %342 = vector.broadcast %cst_79 : f32 to vector<4x128xf32>
    %343 = arith.maximumf %314, %342 : vector<4x128xf32>
    %344 = math.log %343 : vector<4x128xf32>
    %cst_80 = arith.constant 4.8481164 : f32
    %345 = vector.broadcast %cst_80 : f32 to vector<4x128xf32>
    %346 = arith.subf %333, %345 : vector<4x128xf32>
    %347 = arith.select %341, %344, %346 : vector<4x128xi1>, vector<4x128xf32>
    %348 = arith.select %339, %310, %347 : vector<4x128xi1>, vector<4x128xf32>
    %349 = arith.select %337, %308, %348 : vector<4x128xi1>, vector<4x128xf32>
    %350 = arith.addf %246, %349 : vector<4x128xf32>
    %cst_81 = arith.constant dense<0xFF800000> : vector<128xf32>
    %351 = vector.multi_reduction <maximumf>, %3, %cst_81 [0] : vector<4x128xf32> to vector<128xf32>
    %352 = vector.shape_cast %351 : vector<128xf32> to vector<1x128xf32>
    %353 = vector.broadcast %352 : vector<1x128xf32> to vector<4x128xf32>
    %354 = arith.subf %3, %353 : vector<4x128xf32>
    %355 = math.exp %354 : vector<4x128xf32>
    %cst_82 = arith.constant dense<0.000000e+00> : vector<128xf32>
    %356 = vector.multi_reduction <add>, %355, %cst_82 [0] : vector<4x128xf32> to vector<128xf32>
    %357 = vector.shape_cast %356 : vector<128xf32> to vector<1x128xf32>
    %358 = math.log %357 : vector<1x128xf32>
    %359 = arith.addf %352, %358 : vector<1x128xf32>
    %360 = arith.addf %350, %3 : vector<4x128xf32>
    %cst_83 = arith.constant dense<0xFF800000> : vector<128xf32>
    %361 = vector.multi_reduction <maximumf>, %360, %cst_83 [0] : vector<4x128xf32> to vector<128xf32>
    %362 = vector.shape_cast %361 : vector<128xf32> to vector<1x128xf32>
    %363 = vector.broadcast %362 : vector<1x128xf32> to vector<4x128xf32>
    %364 = arith.subf %360, %363 : vector<4x128xf32>
    %365 = math.exp %364 : vector<4x128xf32>
    %cst_84 = arith.constant dense<0.000000e+00> : vector<128xf32>
    %366 = vector.multi_reduction <add>, %365, %cst_84 [0] : vector<4x128xf32> to vector<128xf32>
    %367 = vector.shape_cast %366 : vector<128xf32> to vector<1x128xf32>
    %368 = math.log %367 : vector<1x128xf32>
    %369 = arith.addf %362, %368 : vector<1x128xf32>
    %370 = arith.subf %359, %369 : vector<1x128xf32>
    %371 = vector.shape_cast %370 : vector<1x128xf32> to vector<1x1x128xf32>
    %cst_85 = arith.constant dense<0.000000e+00> : vector<1xf32>
    %372 = vector.multi_reduction <add>, %371, %cst_85 [1, 2] : vector<1x1x128xf32> to vector<1xf32>
    %373 = vector.shape_cast %372 : vector<1xf32> to vector<1x1x1xf32>
    %374 = vector.extract %373[0, 0, 0] : f32 from vector<1x1x1xf32>
    %375 = vector.broadcast %374 : f32 to vector<1x128xf32>
    %c0_86 = arith.constant 0 : index
    %c0_87 = arith.constant 0 : index
    %c0_88 = arith.constant 0 : index
    %c0_89 = arith.constant 0 : index
    %376 = vector.load %arg7[%c0_86, %c0_87, %c0_88, %c0_89] : memref<1x1x1x128xf32, #tpu.memory_space<vmem>>, vector<1x1x1x128xf32>
    %377 = vector.shape_cast %376 : vector<1x1x1x128xf32> to vector<1x128xf32>
    %378 = vector.shape_cast %375 : vector<1x128xf32> to vector<1x1x1x128xf32>
    tpu.vector_store %arg7[%c0_86, %c0_87, %c0_88, %c0_89], %378 {strides = array<i32>} : memref<1x1x1x128xf32, #tpu.memory_space<vmem>>, vector<1x1x1x128xf32>,
    return
  }
  func.func @transform_0(%arg0: i32, %arg1: i32) -> (i32, i32, i32, i32) {
    %c0_i32 = arith.constant 0 : i32
    %c0_i32_0 = arith.constant 0 : i32
    %c0_i32_1 = arith.constant 0 : i32
    return %arg0, %c0_i32, %c0_i32_0, %arg1 : i32, i32, i32, i32
  }
  func.func @transform_1(%arg0: i32, %arg1: i32) -> (i32, i32, i32) {
    %c0_i32 = arith.constant 0 : i32
    %c0_i32_0 = arith.constant 0 : i32
    return %arg0, %c0_i32, %arg1 : i32, i32, i32
  }
  func.func @transform_2(%arg0: i32, %arg1: i32) -> (i32, i32, i32, i32) {
    %c0_i32 = arith.constant 0 : i32
    %c0_i32_0 = arith.constant 0 : i32
    %c0_i32_1 = arith.constant 0 : i32
    return %arg0, %c0_i32, %c0_i32_0, %arg1 : i32, i32, i32, i32
  }
  func.func @transform_3(%arg0: i32, %arg1: i32) -> (i32, i32, i32, i32) {
    %c0_i32 = arith.constant 0 : i32
    %c0_i32_0 = arith.constant 0 : i32
    %c0_i32_1 = arith.constant 0 : i32
    return %arg0, %c0_i32, %c0_i32_0, %arg1 : i32, i32, i32, i32
  }
  func.func @transform_4(%arg0: i32, %arg1: i32) -> (i32, i32, i32, i32) {
    %c0_i32 = arith.constant 0 : i32
    %c0_i32_0 = arith.constant 0 : i32
    %c0_i32_1 = arith.constant 0 : i32
    return %arg0, %c0_i32, %c0_i32_0, %arg1 : i32, i32, i32, i32
  }
  func.func @transform_5(%arg0: i32, %arg1: i32) -> (i32, i32, i32, i32) {
    %c0_i32 = arith.constant 0 : i32
    %c0_i32_0 = arith.constant 0 : i32
    %c0_i32_1 = arith.constant 0 : i32
    return %arg0, %arg1, %c0_i32, %c0_i32_0 : i32, i32, i32, i32
  }
}

</mosaic_0001>

<bundles_post_ra>
// kernel: tpu_custom_call.1
= control target key start
LH: loop header
LB: loop body
LE: loop exit
PB: predicated region body
PF: predicated region fallthrough
CT: control target
= control target key end

     0   :  { %s2101_s0 = inlined_call_operand.hbm [shape: f32[2,3,1,256], index: 0, kind: input, shape index: {}]   ;;  %s2102_s1 = inlined_call_operand.hbm [shape: f32[2,4,256], index: 1, kind: input, shape index: {}]   ;;  %s2103_s2 = inlined_call_operand.hbm [shape: f32[2,3,4,256], index: 2, kind: input, shape index: {}]   ;;  %s2104_s3 = inlined_call_operand.hbm [shape: f32[2,3,4,256], index: 3, kind: input, shape index: {}]   ;;  %s2105_s4 = inlined_call_operand.hbm [shape: f32[2,3,4,256], index: 4, kind: input, shape index: {}]   ;;  %s2106_s5 = inlined_call_operand.hbm [shape: f32[2,2,1,128], index: 5, kind: output, shape index: {}]  }
   0x1   :  { %2121 = sst [smem:[#allocation29_spill]] %s2102_s1 }
   0x2   :  { %2122 = sst [smem:[#allocation30_spill]] %s2104_s3 }
   0x3   :  { %2123 = sst [smem:[#allocation31_spill]] %s2106_s5 }
   0x4   :  { %10 = vsyncpa [#allocation3], 0 }
   0x5   :  { %12 = vsyncpa [#allocation3 + $0x1], 0 }
   0x6   :  { %13 = vsyncpa [#allocation6], 0 }
   0x7   :  { %15 = vsyncpa [#allocation6 + $0x1], 0 }
   0x8   :  { %16 = vsyncpa [#allocation9], 0 }
   0x9   :  { %18 = vsyncpa [#allocation9 + $0x1], 0 }
   0xa   :  { %19 = vsyncpa [#allocation4], 0 }
   0xb   :  { %21 = vsyncpa [#allocation4 + $0x1], 0  ;;  %s1553_s18 = smov 0   ;;  %s1555_s19 = smov 0  }
   0xc   :  { %s1557_s20 = smov 0   ;;  %s1559_s21 = smov 0  }
   0xd   :  { %s1561_s22 = smov 0   ;;  %s1563_s23 = smov 0  }
   0xe   :  { %s1565_s24 = smov 0   ;;  %s1567_s25 = smov 0  }
   0xf LB: > { %2124 = sst [smem:[#allocation16_spill]] %s1481_s18  ;;  %s1594_s26 = sadd.s32 4294967295, %s1509_s25   ;;  %s1509_s25 = sphi %s1567_s25, %s27_s25   ;;  %s1505_s24 = sphi %s1565_s24, %s2182_s24   ;;  %s1501_s23 = sphi %s1563_s23, %s2181_s23   ;;  %s1497_s22 = sphi %s1561_s22, %s2180_s22   ;;  %s1493_s21 = sphi %s1559_s21, %s2179_s21   ;;  %s1489_s20 = sphi %s1557_s20, %s2178_s20   ;;  %s1485_s19 = sphi %s1555_s19, %s2184_s19   ;;  %s1481_s18 = sphi %s1553_s18, %s2183_s18  }
  0x10   : > { %2125 = sst [smem:[#allocation17_spill]] %s1489_s20  ;;  %s1032_s27 = sadd.s32 4294967294, %s1509_s25  }
  0x11   : > { %2126 = sst [smem:[#allocation18_spill]] %s1493_s21  ;;  %s36_s28 = sadd.s32 1, %s1501_s23 }
  0x12   : > { %2127 = sst [smem:[#allocation19_spill]] %s1497_s22  ;;  %s39_s29 = sadd.s32 1, %s1505_s24 }
  0x13   : > { %2128 = sst [smem:[#allocation20_spill]] %s1501_s23  ;;  %p37_p0 = scmp.ge.s32.totalorder %s36_s28, 2 }
  0x14   : > { %2129 = sst [smem:[#allocation21_spill]] %s1505_s24  ;;  %s48_s30 = sadd.s32 1, %s1489_s20 }
  0x15   : > { %2130 = sst [smem:[#allocation22_spill]] %s1509_s25  ;;  %p55_p1 = scmp.ne.s32.totalorder %s1489_s20, %s1485_s19 }
  0x16   : > { %2131 = sst [smem:[#allocation23_spill]] %s1594_s26  ;;  %p56_p2 = scmp.eq.s32.totalorder %s1509_s25, 0 }
  0x17   : > { %s2186_s28 = smov (%p37_p0, %s36_s28), 0  ;;  %s2188_s29 = smov (!%p37_p0, %s39_s29), %s1505_s24 }
  0x18   : > { %2132 = sst [smem:[#allocation24_spill]] %s2186_s28  ;;  %s44_s6 = ssub.s32 %s1501_s23, %s2186_s28 }
  0x19   : > { %p1608_p3 = por %p56_p2, %p55_p1  ;;  %p41_p4 = scmp.ge.s32.totalorder %s2188_s29, 2 }
  0x1a   : > { %p61_p5 = scmp.ne.s32.totalorder %s1485_s19, %s1481_s18  ;;  %p62_p6 = scmp.eq.s32.totalorder %s1594_s26, 0 }
  0x1b   : > { %p199_p7 = scmp.eq.s32.totalorder %s1594_s26, 3  ;;  %s2190_s29 = smov (%p41_p4, %s2188_s29), 0 }
  0x1c   : > { %2134 = sst [smem:[#allocation25_spill]] %s2190_s29  ;;  %p1618_p8 = por %p62_p6, %p61_p5 }
  0x1d   : > { %p1622_p9 = por %p199_p7, %p55_p1  ;;  %s43_s10 = ssub.s32 %s1505_s24, %s2190_s29 }
  0x1e   : > { %p205_p10 = scmp.eq.s32.totalorder %s1032_s27, 3  ;;  %s45_s11 = sor.u32 %s44_s6, %s43_s10 }
  0x1f   : > { %s2136_s9 = scalar_select %p1622_p9, 1, 0 }
  0x20   : > { %p46_p11 = scmp.eq.s32.totalorder %s45_s11, 0  ;;  %p1628_p12 = por %p205_p10, %p61_p5 }
  0x21   : > { %2137 = sst [smem:[#allocation26_spill]] %s2136_s9  ;;  %p1101_p13 = scmp.lt.s32.totalorder %s1509_s25, 4 }
  0x22   : > { %s2138_s12 = scalar_select %p1628_p12, 1, 0 }
  0x23   : > { %s1634_s13 = sand.u32 1, %s1489_s20   ;;  %p1642_p0 = pnand %p1101_p13, %p1608_p3 }
  0x24   : > { %2139 = sst [smem:[#allocation27_spill]] %s2138_s12  ;;  %s1058_s17 = smul.u32 6, %s1505_s24 }
  0x25   : > { %s1637_s14 = scalar_select %p46_p11, %s1489_s20, %s48_s30  }
  0x26   : > { %s2112_s27 = sand.u32 1, %s1509_s25   ;;  %s1649_s6 = sadd.s32 %s1501_s23, %s1058_s17 }
  0x27   : > { %2140 = sst [smem:[#allocation28_spill]] %s1637_s14  ;;  %s1036_s10 = sshll.u32 %s1634_s13, 2 }
  0x28   : > { %s1037_s11 = sshll.u32 %s1505_s24, 1  ;;  %s251_s28 = scalar_lea.vmem [#allocation5], %s1036_s10 }
  0x29   : > { %s256_s29 = sadd.s32 %s1501_s23, %s1037_s11  ;;  %s260_s12 = sshll.u32 %s251_s28, 4  ;;  %s261_s12 = int_to_ptr.vmem [resolvable:$true] %s260_s12 }
  0x2a   : > { %s1038_s18 = sshll.u32 %s256_s29, 6  ;;  %s2142_s1 = sld [smem:[#allocation29_spill]] }
  0x2b   : > { %s1658_s15 = smul.u32 12, %s1634_s13  ;;  %s1662_s20 = scalar_lea.sflag [#allocation6], %s2112_s27 }
  0x2c   : > { %p1666_p1 = pneg %p1642_p0  ;;  %s1278_s11 = scalar_lea.vmem %s261_s12, 64 }
  0x2d   : > { %p1279_p2 = scmp.ne.s32.totalorder %s261_s12, %s1278_s11  ;;  %s1511_s28 = smov [#allocation5]  }
  0x2e   : > { %s1283_s29 = sshll.u32 %s1511_s28, 4  ;;  %s1284_s29 = int_to_ptr.vmem [resolvable:$false] %s1283_s29 }
  0x2f   : > { %p1281_p3 = pnand %p1279_p2, %p1666_p1  ;;  %p1286_p5 = scmp.lt.s32.totalorder %s261_s12, %s1284_s29 }
  0x30   : > { %s258_s7 = scalar_lea.hbm %s2142_s1, %s1038_s18  ;;  %s1285_s18 = scalar_lea.vmem %s1284_s29, 128 }
  0x31   : > { %p1282_p4 = pneg %p1281_p3  ;;  %p1287_p6 = scmp.lt.s32.totalorder %s1285_s18, %s1278_s11 }
  0x33   : > { %p1288_p7 = por %p1287_p6, %p1286_p5 }
  0x35   : > { %p1289_p10 = pnand %p1288_p7, %p1282_p4 }
  0x37   : > { %1292 = shalt.err (!%p1289_p10)
}
  0x38   : > { %1087 = dma.hbm_to_vmem [thread:$0]  (!%p1642_p0), %s258_s7, 64, %s261_s12, %s1662_s20  }
  0x39   : > { %s1676_s14 = sshll.u32 %s1649_s6, 6  ;;  %p1042_p11 = scmp.ge.s32.totalorder %s1509_s25, 1 }
  0x3a   : > { %p331_p13 = scmp.lt.s32.totalorder %s1509_s25, 5  ;;  %s2145_s3 = sld [smem:[#allocation30_spill]] }
  0x3b   : > { %s293_s24 = scalar_lea.vmem [#allocation8], %s1658_s15  ;;  %s2146_s10 = sand.u32 1, %s1509_s25  }
  0x3c   : > { %p1688_p2 = pnand %p1042_p11, %p331_p13  ;;  %s301_s23 = sshll.u32 %s293_s24, 4  ;;  %s302_s23 = int_to_ptr.vmem [resolvable:$true] %s301_s23 }
  0x3d   : > { %s1699_s30 = scalar_lea.sflag [#allocation9], %s2146_s10  ;;  %s1306_s11 = scalar_lea.vmem %s302_s23, 192 }
  0x3e   : > { %p1307_p3 = scmp.ne.s32.totalorder %s302_s23, %s1306_s11  ;;  %s1512_s28 = smov [#allocation8]  }
  0x3f   : > { %s1311_s29 = sshll.u32 %s1512_s28, 4  ;;  %s1312_s29 = int_to_ptr.vmem [resolvable:$false] %s1311_s29 }
  0x40   : > { %s300_s1 = scalar_lea.hbm %s2145_s3, %s1676_s14  ;;  %p1309_p4 = pnand %p1307_p3, %p1666_p1 }
  0x41   : > { %s1313_s18 = scalar_lea.vmem %s1312_s29, 384  ;;  %p1314_p6 = scmp.lt.s32.totalorder %s302_s23, %s1312_s29 }
  0x42   : > { %p1310_p5 = pneg %p1309_p4  ;;  %p1315_p7 = scmp.lt.s32.totalorder %s1313_s18, %s1306_s11 }
  0x44   : > { %p1316_p10 = por %p1315_p7, %p1314_p6 }
  0x46   : > { %p1317_p11 = pnand %p1316_p10, %p1310_p5 }
  0x48   : > { %1320 = shalt.err (!%p1317_p11)
}
  0x49   : > { %s1513_s12 = smov 128   ;;  %s1514_s24 = smov 64  }
  0x4a   : > { %s1515_s7 = smov 4   ;;  %s1035_s10 = sshll.u32 %s1649_s6, 4 }
  0x4b   : > { %1093 = dma.hbm_to_vmem [thread:$0]  (!%p1642_p0), %s300_s1, 192, %s302_s23, %s1699_s30, %s1513_s12, %s1514_s24, %s1515_s7  }
  0x4c   : > { %s2147_s28 = smul.u32 3, %s1634_s13  ;;  %s236_s25 = scalar_lea.hbm %s2101_s0, %s1035_s10 }
  0x4d   : > { %s226_s5 = scalar_lea.sflag [#allocation3], %s1634_s13  ;;  %s1516_s21 = smov [#allocation2]  }
  0x4e   : > { %s229_s11 = scalar_lea.vmem [#allocation2], %s2147_s28  ;;  %s1339_s22 = sshll.u32 %s1516_s21, 4  ;;  %s1340_s22 = int_to_ptr.vmem [resolvable:$false] %s1339_s22 }
  0x4f   : > { %s237_s18 = sshll.u32 %s229_s11, 4  ;;  %s1341_s26 = scalar_lea.vmem %s1340_s22, 96  ;;  %s238_s18 = int_to_ptr.vmem [resolvable:$true] %s237_s18 }
  0x50   : > { %s1334_s9 = scalar_lea.vmem %s238_s18, 48  ;;  %p1342_p5 = scmp.lt.s32.totalorder %s238_s18, %s1340_s22 }
  0x51   : > { %p1335_p13 = scmp.ne.s32.totalorder %s238_s18, %s1334_s9  ;;  %p1343_p6 = scmp.lt.s32.totalorder %s1341_s26, %s1334_s9 }
  0x53   : > { %p1337_p3 = pnand %p1335_p13, %p1666_p1  ;;  %p1344_p7 = por %p1343_p6, %p1342_p5 }
  0x55   : > { %p1338_p4 = pneg %p1337_p3 }
  0x57   : > { %p1345_p10 = pnand %p1344_p7, %p1338_p4 }
  0x59   : > { %1348 = shalt.err (!%p1345_p10)
}
  0x5a   : > { %s1517_s1 = smov 32   ;;  %s1518_s3 = smov 16  }
  0x5b   : > { %s1519_s23 = smov 1   ;;  %s271_s13 = scalar_lea.vmem [#allocation7], %s1658_s15 }
  0x5c   : > { %1084 = dma.hbm_to_vmem [thread:$0]  (!%p1642_p0), %s236_s25, 48, %s238_s18, %s226_s5, %s1517_s1, %s1518_s3, %s1519_s23  }
  0x5d   : > { %s279_s6 = sshll.u32 %s271_s13, 4  ;;  %s315_s21 = scalar_lea.vmem [#allocation10], %s1658_s15  ;;  %s280_s6 = int_to_ptr.vmem [resolvable:$true] %s279_s6 }
  0x5e   : > { %s323_s10 = sshll.u32 %s315_s21, 4  ;;  %s1362_s28 = scalar_lea.vmem %s280_s6, 192  ;;  %s324_s10 = int_to_ptr.vmem [resolvable:$true] %s323_s10 }
  0x5f   : > { %p1363_p11 = scmp.ne.s32.totalorder %s280_s6, %s1362_s28  ;;  %s1520_s22 = smov [#allocation7]  }
  0x60   : > { %s1367_s26 = sshll.u32 %s1520_s22, 4  ;;  %s1368_s26 = int_to_ptr.vmem [resolvable:$false] %s1367_s26 }
  0x61   : > { %p1365_p13 = pnand %p1363_p11, %p1666_p1  ;;  %s1369_s9 = scalar_lea.vmem %s1368_s26, 384 }
  0x62   : > { %p1370_p4 = scmp.lt.s32.totalorder %s280_s6, %s1368_s26  ;;  %p1371_p5 = scmp.lt.s32.totalorder %s1369_s9, %s1362_s28 }
  0x63   : > { %p1366_p3 = pneg %p1365_p13 }
  0x64   : > { %p1372_p6 = por %p1371_p5, %p1370_p4 }
  0x66   : > { %p1373_p7 = pnand %p1372_p6, %p1366_p3 }
  0x68   : > { %1376 = shalt.err (!%p1373_p7)
}
  0x69   : > { %s2148_s15 = scalar_lea.hbm %s2103_s2, %s1676_s14  ;;  %s1390_s11 = scalar_lea.vmem %s324_s10, 192 }
  0x6a   : > { %1090 = dma.hbm_to_vmem [thread:$0]  (!%p1642_p0), %s2148_s15, 192, %s280_s6, %s1662_s20, %s1513_s12, %s1514_s24, %s1515_s7  }
  0x6b   : > { %p1391_p10 = scmp.ne.s32.totalorder %s324_s10, %s1390_s11  ;;  %s1521_s18 = smov [#allocation10]  }
  0x6c   : > { %s1395_s29 = sshll.u32 %s1521_s18, 4  ;;  %s1396_s29 = int_to_ptr.vmem [resolvable:$false] %s1395_s29 }
  0x6d   : > { %p1393_p11 = pnand %p1391_p10, %p1666_p1  ;;  %s1397_s1 = scalar_lea.vmem %s1396_s29, 384 }
  0x6e   : > { %p1398_p3 = scmp.lt.s32.totalorder %s324_s10, %s1396_s29  ;;  %p1399_p4 = scmp.lt.s32.totalorder %s1397_s1, %s1390_s11 }
  0x6f   : > { %p1394_p13 = pneg %p1393_p11 }
  0x70   : > { %p1400_p5 = por %p1399_p4, %p1398_p3 }
  0x72   : > { %p1401_p6 = pnand %p1400_p5, %p1394_p13 }
  0x74   : > { %1404 = shalt.err (!%p1401_p6)
}
  0x75   : > { %s2149_s17 = scalar_lea.hbm %s2105_s4, %s1676_s14  ;;  %335 = sbr.rel (%p1688_p2) target bundleno = 578 (0x242), region = 40 }
  0x76   : > { %1096 = dma.hbm_to_vmem [thread:$0]  (!%p1642_p0), %s2149_s17, 192, %s324_s10, %s1699_s30, %s1513_s12, %s1514_s24, %s1515_s7  }
  0x77   : > { %s1751_s23 = sand.u32 (!%p1688_p2), 1, %s1485_s19  }
  0x78   : > { %s1065_s16 = smul.u32 (!%p1688_p2), 3, %s1751_s23  ;;  %s338_s13 = scalar_lea.sflag (!%p1688_p2), [#allocation3], %s1751_s23 }
  0x7a   : > { %s1755_s6 = scalar_lea.vmem [#allocation2], %s1065_s16 }
  0x7b   : > { %1464 = dma.done.wait (%p1618_p8), %s338_s13, 48  }
  0x7c   : > { %1466 = vsyncadd (%p1618_p8), %s338_s13, 4294967248  ;;  %s2150_s14 = sld [smem:[#allocation23_spill]]  ;;  %s1043_s30 = sshll.u32 %s1751_s23, 2 }
  0x7d   : > { %s1763_s24 = scalar_lea.vmem [#allocation5], %s1043_s30 }
  0x82   : > { %s346_s27 = sand.u32 1, %s2150_s14  }
  0x83   : > { %s347_s12 = scalar_lea.sflag [#allocation6], %s346_s27 }
  0x84   : > { %1468 = dma.done.wait (%p1618_p8), %s347_s12, 256  }
  0x85   : > { %1470 = vsyncadd (%p1618_p8), %s347_s12, 4294967040  ;;  %s1770_s7 = smul.u32 12, %s1751_s23  ;;  %s365_s10 = scalar_lea.sflag [#allocation9], %s346_s27 }
  0x87   : > { %s1773_s21 = scalar_lea.vmem [#allocation7], %s1770_s7  ;;  %s368_s28 = scalar_lea.vmem [#allocation8], %s1770_s7 }
  0x88   : > { %1472 = dma.done.wait (%p1618_p8), %s365_s10, 384  }
  0x89   : > { %1474 = vsyncadd (%p1618_p8), %s365_s10, 4294966912  ;;  %v430_v0 = vld [vmem:[%s368_s28] sm:$0xf]  ;;  %v431_v1 = vld [vmem:[%s368_s28 + $0x4] sm:$0xf]  ;;  %s377_s8 = scalar_lea.vmem [#allocation10], %s1770_s7 }
  0x8a   : > { %v432_v2 = vld [vmem:[%s368_s28 + $0x8] sm:$0xf]  ;;  %v457_v3 = vmul.f32 0.6931472, %v430_v0  ;;  %v1780_v5 = vmul.f32 0.6931472, %v431_v1 }
  0x8b   : > { %v1782_v6 = vmul.f32 0.6931472, %v432_v2  ;;  %v434_v22 = vld [vmem:[%s377_s8 + $0x4] sm:$0xf]  ;;  %v433_v24 = vld [vmem:[%s377_s8] sm:$0xf] }
  0x8c   : > { %v461_v4 = vand.u32 2147483647, %v457_v3  ;;  %v569_v8 = vand.u32 2147483647, %v1780_v5  ;;  %v435_v28 = vld [vmem:[%s377_s8 + $0x8] sm:$0xf]  ;;  %vm459_vm1 = vcmp.ne.f32.partialorder %v457_v3, %v457_v3  ;;  %vm567_vm4 = vcmp.ne.f32.partialorder %v1780_v5, %v1780_v5 }
  0x8d   : > { %v676_v10 = vand.u32 2147483647, %v1782_v6  ;;  %v458_v34 = vmax.f32 %v457_v3, 0.0  ;;  %v566_v40 = vmax.f32 %v1780_v5, 0.0  ;;  %v673_v45 = vmax.f32 %v1782_v6, 0.0  ;;  %s2169_s22 = sld [smem:[#allocation19_spill]] }
  0x8e   : > { %v462_v7 = vsub.f32 0.0, %v461_v4  ;;  %v570_v11 = vsub.f32 0.0, %v569_v8  ;;  %vm674_vm5 = vcmp.ne.f32.partialorder %v1782_v6, %v1782_v6  ;;  %v1798_v56 = vld [vmem:[%s1755_s6] ss:$0 sm:$0xff]  ;;  %v1811_v1 = vld [vmem:[%s1755_s6 + $0x1] ss:$0 sm:$0xff] }
  0x8f   : > { %v677_v12 = vsub.f32 0.0, %v676_v10  ;;  %v427_v2 = vld [vmem:[%s1773_s21] sm:$0xf]  ;;  %s2170_s26 = sld [smem:[#allocation18_spill]]  ;;  %s422_s11 = scalar_lea.vmem [#allocation11], %s1751_s23 }
  0x90   : > { %v463_v9 = vmul.f32 1.442695, %v462_v7  ;;  %v571_v13 = vmul.f32 1.442695, %v570_v11  ;;  %v483_v8 = vsub.f32 %v1798_v56, %v427_v2  ;;  %s856_s18 = sshll.u32 %s422_s11, 4  ;;  %s2172_s20 = sld [smem:[#allocation31_spill]]  ;;  %s857_s18 = int_to_ptr.vmem [resolvable:$true] %s856_s18 }
  0x91   : > { %v678_v14 = vmul.f32 1.442695, %v677_v12  ;;  %s842_s13 = scalar_lea.sflag [#allocation4], %s1751_s23  ;;  %s1522_s14 = smov [#allocation11]  }
  0x92   : > { %1173 = vpow2.f32 %v463_v9  ;;  %v484_v11 = vadd.f32 0.003921569, %v483_v8  ;;  %v1046_v12 = vadd.f32 -0.003921569, %v483_v8  ;;  %s1409_s27 = sshll.u32 %s1522_s14, 4  ;;  %s1410_s27 = int_to_ptr.vmem [resolvable:$false] %s1409_s27 }
  0x93   : > { %1175 = vpow2.f32 %v571_v13  ;;  %v1824_v13 = vld [vmem:[%s1755_s6 + $0x2] ss:$0 sm:$0xff]  ;;  %s1053_s5 = sshll.u32 %s2169_s22, 1  ;;  %s1405_s6 = scalar_lea.vmem %s857_s18, 16 }
  0x94   : > { %1177 = vpow2.f32 %v678_v14  ;;  %p1406_p8 = scmp.ne.s32.totalorder %s857_s18, %s1405_s6  ;;  %s1411_s30 = scalar_lea.vmem %s1410_s27, 32 }
  0x95   : > { %s852_s25 = sadd.s32 %s2170_s26, %s1053_s5  ;;  %p1412_p2 = scmp.lt.s32.totalorder %s857_s18, %s1410_s27 }
  0x96   : > { %s1054_s15 = sshll.u32 %s852_s25, 4  ;;  %s2173_s3 = smov %s2172_s20 }
  0x97   : > { %s2054_s17 = scalar_lea.hbm %s2172_s20, %s1054_s15  ;;  %p1407_p0 = pnand %p1406_p8, %p1622_p9 }
  0x98   : > { %p1413_p7 = scmp.lt.s32.totalorder %s1411_s30, %s1405_s6 }
  0x99   : > { %p1408_p1 = pneg %p1407_p0 }
  0x9a   : > { %p1414_p10 = por %p1413_p7, %p1412_p2 }
  0x9c   : > { %p1415_p11 = pnand %p1414_p10, %p1408_p1 }
  0x9f   : > { %v1174_v15 = vpop.eup %1173 }
  0xa0   : > { %v465_v16 = vadd.f32 1.0, %v1174_v15  ;;  %v1176_v17 = vpop.eup %1175  ;;  %v468_v21 = vmul.f32 -0.5, %v1174_v15  ;;  %v471_v27 = vand.u32 2147483647, %v1174_v15 }
  0xa1   : > { %v1178_v18 = vpop.eup %1177  ;;  %v573_v19 = vadd.f32 1.0, %v1176_v17  ;;  %v576_v23 = vmul.f32 -0.5, %v1176_v17  ;;  %v579_v31 = vand.u32 2147483647, %v1176_v17 }
  0xa2   : > { %1179 = vlog2.f32 %v465_v16  ;;  %v680_v20 = vadd.f32 1.0, %v1178_v18  ;;  %v469_v25 = vadd.f32 1.0, %v468_v21  ;;  %v683_v26 = vmul.f32 -0.5, %v1178_v18 }
  0xa3   : > { %1181 = vlog2.f32 %v573_v19  ;;  %v577_v29 = vadd.f32 1.0, %v576_v23  ;;  %vm472_vm0 = vcmp.lt.f32.partialorder %v471_v27, 0.0004427343  ;;  %v686_v35 = vand.u32 2147483647, %v1178_v18 }
  0xa4   : > { %1183 = vlog2.f32 %v680_v20  ;;  %v470_v30 = vmul.f32 %v1174_v15, %v469_v25  ;;  %v684_v32 = vadd.f32 1.0, %v683_v26  ;;  %vm580_vm2 = vcmp.lt.f32.partialorder %v579_v31, 0.0004427343 }
  0xa5   : > { %1185 = vtanh.f32 %v434_v22  ;;  %v578_v37 = vmul.f32 %v1176_v17, %v577_v29  ;;  %vm687_vm3 = vcmp.lt.f32.partialorder %v686_v35, 0.0004427343 }
  0xa6   : > { %1187 = vtanh.f32 %v433_v24  ;;  %v685_v41 = vmul.f32 %v1178_v18, %v684_v32 }
  0xa7   : > { %1189 = vtanh.f32 %v435_v28 }
  0xaf   : > { %v1180_v33 = vpop.eup %1179 }
  0xb0   : > { %v467_v36 = vmul.f32 0.6931472, %v1180_v33  ;;  %v1182_v38 = vpop.eup %1181 }
  0xb1   : > { %v1184_v42 = vpop.eup %1183  ;;  %v575_v44 = vmul.f32 0.6931472, %v1182_v38 }
  0xb2   : > { %v473_v39 = vsel %vm472_vm0, %v470_v30, %v467_v36  ;;  %v682_v46 = vmul.f32 0.6931472, %v1184_v42  ;;  %v1186_v55 = vpop.eup %1185 }
  0xb3   : > { %v474_v43 = vadd.f32 %v473_v39, %v458_v34  ;;  %v581_v48 = vsel %vm580_vm2, %v578_v37, %v575_v44  ;;  %v1188_v59 = vpop.eup %1187  ;;  %v447_v62 = vmul.f32 %v1186_v55, %v1798_v56  ;;  %vm785_vm2 = vcmask 1043456  }
  0xb4   : > { %v582_v50 = vadd.f32 %v581_v48, %v566_v40  ;;  %v688_v51 = vsel %vm687_vm3, %v685_v41, %v682_v46  ;;  %v1190_v0 = vpop.eup %1189  ;;  %v445_v4 = vmul.f32 %v1188_v59, %v1798_v56 }
  0xb5   : > { %v475_v47 = vsel %vm459_vm1, %v457_v3, %v474_v43  ;;  %v689_v52 = vadd.f32 %v688_v51, %v673_v45  ;;  %v429_v3 = vld [vmem:[%s1773_s21 + $0x8] sm:$0xf]  ;;  %v455_v7 = vmul.f32 %v1190_v0, %v1811_v1 }
  0xb6   : > { %v1791_v49 = vmul.f32 1.442695, %v475_v47  ;;  %v583_v54 = vsel %vm567_vm4, %v1780_v5, %v582_v50  ;;  %v428_v5 = vld [vmem:[%s1773_s21 + $0x4] sm:$0xf] }
  0xb7   : > { %v1800_v57 = vmul.f32 1.442695, %v583_v54  ;;  %v690_v58 = vsel %vm674_vm5, %v1782_v6, %v689_v52  ;;  %v448_v6 = vadd.f32 %v447_v62, %v429_v3  ;;  %v446_v9 = vadd.f32 %v445_v4, %v428_v5 }
  0xb8   : > { %v478_v53 = vmax.f32 %v1791_v49, 0.000911882  ;;  %v1805_v60 = vmul.f32 1.442695, %v690_v58 }
  0xb9   : > { %v585_v61 = vmax.f32 %v1800_v57, 0.000911882  ;;  %v456_v10 = vadd.f32 %v455_v7, %v448_v6  ;;  %v590_v14 = vsub.f32 %v1811_v1, %v446_v9 }
  0xba   : > { %1191 = vrcp.f32 %v478_v53  ;;  %v692_v63 = vmax.f32 %v1805_v60, 0.000911882 }
  0xbb   : > { %1193 = vrcp.f32 %v585_v61  ;;  %v703_v18 = vsub.f32 %v1824_v13, %v456_v10  ;;  %v591_v19 = vadd.f32 0.003921569, %v590_v14  ;;  %v1048_v20 = vadd.f32 -0.003921569, %v590_v14 }
  0xbc   : > { %1195 = vrcp.f32 %v692_v63 }
  0xbd   : > { %v704_v26 = vadd.f32 0.003921569, %v703_v18  ;;  %v1051_v32 = vadd.f32 -0.003921569, %v703_v18 }
  0xc7   : > { %v1192_v15 = vpop.eup %1191 }
  0xc8   : > { %v1827_v16 = vmul.f32 %v1192_v15, %v484_v11  ;;  %v1829_v17 = vmul.f32 %v1192_v15, %v1046_v12  ;;  %v1194_v21 = vpop.eup %1193  ;;  %v1834_v24 = vmul.f32 %v1192_v15, %v483_v8 }
  0xc9   : > { %v1196_v27 = vpop.eup %1195  ;;  %v1836_v29 = vmul.f32 %v1194_v21, %v591_v19  ;;  %v1838_v30 = vmul.f32 %v1194_v21, %v1048_v20  ;;  %v1845_v39 = vmul.f32 %v1194_v21, %v590_v14 }
  0xca   : > { %v491_v22 = vand.u32 2147483647, %v1827_v16  ;;  %v509_v23 = vand.u32 2147483647, %v1829_v17  ;;  %v537_v34 = vand.u32 2147483647, %v1834_v24  ;;  %v1842_v36 = vmul.f32 %v1196_v27, %v704_v26 }
  0xcb   : > { %v598_v35 = vand.u32 2147483647, %v1836_v29  ;;  %v616_v38 = vand.u32 2147483647, %v1838_v30  ;;  %v1847_v43 = vmul.f32 %v1196_v27, %v1051_v32  ;;  %v1851_v48 = vmul.f32 %v1196_v27, %v703_v18 }
  0xcc   : > { %v492_v25 = vsub.f32 0.0, %v491_v22  ;;  %v510_v28 = vsub.f32 0.0, %v509_v23  ;;  %v538_v40 = vsub.f32 0.0, %v537_v34  ;;  %v711_v44 = vand.u32 2147483647, %v1842_v36 }
  0xcd   : > { %v599_v37 = vsub.f32 0.0, %v598_v35  ;;  %v617_v42 = vsub.f32 0.0, %v616_v38  ;;  %v729_v47 = vand.u32 2147483647, %v1847_v43  ;;  %v644_v51 = vand.u32 2147483647, %v1845_v39 }
  0xce   : > { %v493_v31 = vmul.f32 1.442695, %v492_v25  ;;  %v511_v33 = vmul.f32 1.442695, %v510_v28  ;;  %v712_v46 = vsub.f32 0.0, %v711_v44  ;;  %v488_v27 = vmax.f32 %v1827_v16, 0.0 }
  0xcf   : > { %v600_v41 = vmul.f32 1.442695, %v599_v37  ;;  %v618_v45 = vmul.f32 1.442695, %v617_v42  ;;  %v539_v50 = vmul.f32 1.442695, %v538_v40  ;;  %vm489_vm6 = vcmp.ne.f32.partialorder %v1827_v16, %v1827_v16 }
  0xd0   : > { %1197 = vpow2.f32 %v493_v31  ;;  %v713_v52 = vmul.f32 1.442695, %v712_v46  ;;  %v730_v54 = vsub.f32 0.0, %v729_v47  ;;  %v757_v58 = vand.u32 2147483647, %v1851_v48 }
  0xd1   : > { %1199 = vpow2.f32 %v511_v33  ;;  %v645_v59 = vsub.f32 0.0, %v644_v51  ;;  %v506_v28 = vmax.f32 %v1829_v17, 0.0  ;;  %vm507_vm7 = vcmp.ne.f32.partialorder %v1829_v17, %v1829_v17 }
  0xd2   : > { %1201 = vpow2.f32 %v600_v41  ;;  %v731_v55 = vmul.f32 1.442695, %v730_v54  ;;  %v758_v3 = vsub.f32 0.0, %v757_v58  ;;  %v595_v38 = vmax.f32 %v1836_v29, 0.0 }
  0xd3   : > { %1203 = vpow2.f32 %v618_v45  ;;  %v646_v5 = vmul.f32 1.442695, %v645_v59  ;;  %vm596_vm10 = vcmp.ne.f32.partialorder %v1836_v29, %v1836_v29  ;;  %v613_v47 = vmax.f32 %v1838_v30, 0.0 }
  0xd4   : > { %1205 = vpow2.f32 %v713_v52  ;;  %v759_v7 = vmul.f32 1.442695, %v758_v3  ;;  %vm614_vm11 = vcmp.ne.f32.partialorder %v1838_v30, %v1838_v30  ;;  %vm709_vm0 = vcmp.ne.f32.partialorder %v1842_v36, %v1842_v36 }
  0xd5   : > { %1207 = vpow2.f32 %v539_v50  ;;  %v708_v50 = vmax.f32 %v1842_v36, 0.0  ;;  %vm727_vm1 = vcmp.ne.f32.partialorder %v1847_v43, %v1847_v43  ;;  %vm535_vm4 = vcmp.ne.f32.partialorder %v1834_v24, %v1834_v24 }
  0xd6   : > { %1209 = vpow2.f32 %v731_v55 }
  0xdd   : > { %v1198_v62 = vpop.eup %1197 }
  0xde   : > { %v1200_v0 = vpop.eup %1199  ;;  %v495_v2 = vadd.f32 1.0, %v1198_v62  ;;  %v498_v10 = vmul.f32 -0.5, %v1198_v62  ;;  %v501_v21 = vand.u32 2147483647, %v1198_v62 }
  0xdf   : > { %v513_v4 = vadd.f32 1.0, %v1200_v0  ;;  %v1202_v6 = vpop.eup %1201  ;;  %v516_v11 = vmul.f32 -0.5, %v1200_v0  ;;  %v519_v25 = vand.u32 2147483647, %v1200_v0 }
  0xe0   : > { %1211 = vlog2.f32 %v495_v2  ;;  %v602_v8 = vadd.f32 1.0, %v1202_v6  ;;  %v1855_v9 = vpop.eup %1203  ;;  %v499_v18 = vadd.f32 1.0, %v498_v10  ;;  %v605_v23 = vmul.f32 -0.5, %v1202_v6 }
  0xe1   : > { %1213 = vlog2.f32 %v513_v4  ;;  %v620_v12 = vadd.f32 1.0, %v1855_v9  ;;  %v1858_v14 = vpop.eup %1205  ;;  %v517_v22 = vadd.f32 1.0, %v516_v11  ;;  %v623_v33 = vmul.f32 -0.5, %v1855_v9 }
  0xe2   : > { %1215 = vpow2.f32 %v646_v5  ;;  %v1860_v15 = vpop.eup %1207  ;;  %v715_v19 = vadd.f32 1.0, %v1858_v14  ;;  %v500_v32 = vmul.f32 %v1198_v62, %v499_v18  ;;  %vm1874_vm8 = vcmp.lt.f32.partialorder %v501_v21, 0.0004427343 }
  0xe3   : > { %1217 = vlog2.f32 %v602_v8  ;;  %v1863_v20 = vpop.eup %1209  ;;  %v541_v31 = vadd.f32 1.0, %v1860_v15  ;;  %v518_v37 = vmul.f32 %v1200_v0, %v517_v22  ;;  %v606_v40 = vadd.f32 1.0, %v605_v23 }
  0xe4   : > { %1219 = vpow2.f32 %v759_v7  ;;  %v733_v26 = vadd.f32 1.0, %v1863_v20  ;;  %vm1879_vm9 = vcmp.lt.f32.partialorder %v519_v25, 0.0004427343  ;;  %v608_v45 = vand.u32 2147483647, %v1202_v6 }
  0xe5   : > { %1221 = vlog2.f32 %v620_v12  ;;  %v624_v54 = vadd.f32 1.0, %v623_v33  ;;  %v626_v55 = vand.u32 2147483647, %v1855_v9  ;;  %v718_v58 = vmul.f32 -0.5, %v1858_v14 }
  0xe6   : > { %1223 = vlog2.f32 %v715_v19  ;;  %v607_v0 = vmul.f32 %v1202_v6, %v606_v40  ;;  %v736_v2 = vmul.f32 -0.5, %v1863_v20  ;;  %v544_v5 = vmul.f32 -0.5, %v1860_v15 }
  0xe7   : > { %1225 = vlog2.f32 %v733_v26  ;;  %vm1899_vm12 = vcmp.lt.f32.partialorder %v608_v45, 0.0004427343  ;;  %v726_v8 = vmax.f32 %v1847_v43, 0.0  ;;  %v721_v18 = vand.u32 2147483647, %v1858_v14 }
  0xe8   : > { %1227 = vlog2.f32 %v541_v31  ;;  %v625_v23 = vmul.f32 %v1855_v9, %v624_v54  ;;  %v719_v25 = vadd.f32 1.0, %v718_v58  ;;  %vm1926_vm13 = vcmp.lt.f32.partialorder %v626_v55, 0.0004427343 }
  0xe9   : > { %v737_v31 = vadd.f32 1.0, %v736_v2  ;;  %vm1932_vm14 = vcmp.lt.f32.partialorder %v721_v18, 0.0004427343  ;;  %v545_v49 = vadd.f32 1.0, %v544_v5 }
  0xeb   : > { %v546_v7 = vmul.f32 %v1860_v15, %v545_v49  ;;  %v754_v49 = vmax.f32 %v1851_v48, 0.0 }
  0xed   : > { %v1212_v34 = vpop.eup %1211 }
  0xee   : > { %v1214_v41 = vpop.eup %1213  ;;  %v497_v42 = vmul.f32 0.6931472, %v1212_v34 }
  0xef   : > { %v515_v46 = vmul.f32 0.6931472, %v1214_v41  ;;  %v1887_v51 = vpop.eup %1215  ;;  %v720_v41 = vmul.f32 %v1858_v14, %v719_v25 }
  0xf0   : > { %v503_v52 = vsel %vm1874_vm8, %v500_v32, %v497_v42  ;;  %v1218_v3 = vpop.eup %1217  ;;  %v648_v12 = vadd.f32 1.0, %v1887_v51  ;;  %v654_v57 = vand.u32 2147483647, %v1887_v51  ;;  %vm755_vm8 = vcmp.ne.f32.partialorder %v1851_v48, %v1851_v48 }
  0xf1   : > { %v504_v59 = vadd.f32 %v503_v52, %v488_v27  ;;  %v521_v62 = vsel %vm1879_vm9, %v518_v37, %v515_v46  ;;  %v1904_v10 = vpop.eup %1219  ;;  %v604_v6 = vmul.f32 0.6931472, %v1218_v3  ;;  %v738_v46 = vmul.f32 %v1863_v20, %v737_v31 }
  0xf2   : > { %v522_v4 = vadd.f32 %v521_v62, %v506_v28  ;;  %v1222_v19 = vpop.eup %1221  ;;  %1229 = vlog2.f32 %v648_v12  ;;  %v547_v62 = vand.u32 2147483647, %v1860_v15  ;;  %v651_v3 = vmul.f32 -0.5, %v1887_v51  ;;  %v1991_v12 = vld [vmem:[%s1763_s24] sm:$0xf] }
  0xf3   : > { %v505_v11 = vsel %vm489_vm6, %v1827_v16, %v504_v59  ;;  %v610_v27 = vsel %vm1899_vm12, %v607_v0, %v604_v6  ;;  %v622_v34 = vmul.f32 0.6931472, %v1222_v19  ;;  %v1224_v35 = vpop.eup %1223  ;;  %v534_v19 = vmax.f32 %v1834_v24, 0.0 }
  0xf4   : > { %v1916_v21 = vsel %vm507_vm7, %v1829_v17, %v522_v4  ;;  %v1919_v22 = vsub.f32 %v1827_v16, %v505_v11  ;;  %v611_v33 = vadd.f32 %v610_v27, %v595_v38  ;;  %v739_v16 = vand.u32 2147483647, %v1863_v20  ;;  %v1226_v42 = vpop.eup %1225 }
  0xf5   : > { %v528_v26 = vsub.f32 %v1829_v17, %v1916_v21  ;;  %v761_v17 = vadd.f32 1.0, %v1904_v10  ;;  %v628_v38 = vsel %vm1926_vm13, %v625_v23, %v622_v34  ;;  %v717_v52 = vmul.f32 0.6931472, %v1224_v35 }
  0xf6   : > { %v526_v32 = vmul.f32 1.442695, %v1919_v22  ;;  %v612_v40 = vsel %vm596_vm10, %v1836_v29, %v611_v33  ;;  %v629_v44 = vadd.f32 %v628_v38, %v613_v47  ;;  %v735_v54 = vmul.f32 0.6931472, %v1226_v42  ;;  %v1228_v47 = vpop.eup %1227 }
  0xf7   : > { %v529_v9 = vmul.f32 1.442695, %v528_v26  ;;  %v1945_v45 = vsub.f32 %v1836_v29, %v612_v40  ;;  %vm1948_vm15 = vcmp.lt.f32.partialorder %v739_v16, 0.0004427343  ;;  %v723_v58 = vsel %vm1932_vm14, %v720_v41, %v717_v52 }
  0xf8   : > { %1231 = vpow2.f32 %v526_v32  ;;  %v1958_v14 = vsel %vm614_vm11, %v1838_v30, %v629_v44  ;;  %v741_v59 = vsel %vm1948_vm15, %v738_v46, %v735_v54  ;;  %v543_v5 = vmul.f32 0.6931472, %v1228_v47 }
  0xf9   : > { %1233 = vpow2.f32 %v529_v9  ;;  %v633_v29 = vmul.f32 1.442695, %v1945_v45  ;;  %v635_v20 = vsub.f32 %v1838_v30, %v1958_v14  ;;  %v742_v0 = vadd.f32 %v741_v59, %v726_v8 }
  0xfa   : > { %1235 = vlog2.f32 %v478_v53  ;;  %v724_v53 = vadd.f32 %v723_v58, %v708_v50  ;;  %vm1983_vm3 = vcmp.lt.f32.partialorder %v547_v62, 0.0004427343  ;;  %v652_v15 = vadd.f32 1.0, %v651_v3 }
  0xfb   : > { %1237 = vlog2.f32 %v761_v17  ;;  %v636_v30 = vmul.f32 1.442695, %v635_v20  ;;  %v1975_v4 = vsel %vm727_vm1, %v1847_v43, %v742_v0  ;;  %v549_v25 = vsel %vm1983_vm3, %v546_v7, %v543_v5 }
  0xfc   : > { %1239 = vpow2.f32 %v633_v29  ;;  %v725_v2 = vsel %vm709_vm0, %v1842_v36, %v724_v53  ;;  %v748_v11 = vsub.f32 %v1847_v43, %v1975_v4  ;;  %v786_v43 = vsel %vm785_vm2, %v1991_v12, -inf }
  0xfd   : > { %1241 = vpow2.f32 %v636_v30  ;;  %v1978_v50 = vsub.f32 %v1842_v36, %v725_v2  ;;  %v550_v31 = vadd.f32 %v549_v25, %v534_v19  ;;  %v653_v33 = vmul.f32 %v1887_v51, %v652_v15 }
  0xfe   : > { %1243 = vlog2.f32 %v585_v61  ;;  %v749_v36 = vmul.f32 1.442695, %v748_v11  ;;  %v764_v61 = vmul.f32 -0.5, %v1904_v10  ;;  %v787_v34 = vrot.slane %v786_v43, 4 }
  0xff   : > { %v746_v6 = vmul.f32 1.442695, %v1978_v50  ;;  %v1230_v18 = vpop.eup %1229  ;;  %vm2005_vm5 = vcmp.lt.f32.partialorder %v654_v57, 0.0004427343  ;;  %v767_v17 = vand.u32 2147483647, %v1904_v10  ;;  %v551_v51 = vsel %vm535_vm4, %v1834_v24, %v550_v31 }
 0x100   : > { %v650_v32 = vmul.f32 0.6931472, %v1230_v18  ;;  %v765_v9 = vadd.f32 1.0, %v764_v61  ;;  %v641_v40 = vmax.f32 %v1845_v39, 0.0  ;;  %v788_v46 = vmax.f32 %v786_v43, %v787_v34 }
 0x101   : > { %1245 = vpow2.f32 %v746_v6  ;;  %vm2015_vm6 = vcmp.lt.f32.partialorder %v767_v17, 0.0004427343  ;;  %v552_v47 = vmul.f32 2.0, %v551_v51  ;;  %vm642_vm7 = vcmp.ne.f32.partialorder %v1845_v39, %v1845_v39 }
 0x102   : > { %1247 = vpow2.f32 %v749_v36  ;;  %v656_v38 = vsel %vm2005_vm5, %v653_v33, %v650_v32  ;;  %v766_v44 = vmul.f32 %v1904_v10, %v765_v9  ;;  %v789_v59 = vrot.slane %v788_v46, 2 }
 0x103   : > { %1249 = vlog2.f32 %v692_v63  ;;  %v657_v20 = vadd.f32 %v656_v38, %v641_v40  ;;  %v525_v15 = vsub.f32 0.0, %v1916_v21  ;;  %vm555_vm10 = vcmp.eq.f32.partialorder %v1798_v56, 1.0 }
 0x104   : > { %v790_v11 = vmax.f32 %v788_v46, %v789_v59  ;;  %vm554_vm11 = vcmp.eq.f32.partialorder %v1798_v56, -1.0  ;;  %vm662_vm13 = vcmp.eq.f32.partialorder %v1811_v1, 1.0  ;;  %vm661_vm14 = vcmp.eq.f32.partialorder %v1811_v1, -1.0 }
 0x105   : > { %v1232_v23 = vpop.eup %1231  ;;  %v658_v2 = vsel %vm642_vm7, %v1845_v39, %v657_v20  ;;  %v745_v17 = vsub.f32 0.0, %v1975_v4  ;;  %vm775_vm0 = vcmp.eq.f32.partialorder %v1824_v13, 1.0  ;;  %vm774_vm1 = vcmp.eq.f32.partialorder %v1824_v13, -1.0 }
 0x106   : > { %v1234_v26 = vpop.eup %1233  ;;  %v659_v6 = vmul.f32 2.0, %v658_v2  ;;  %v791_v25 = vrot.slane %v790_v11, 1  ;;  %vm828_vm3 = vcmask 1040384  }
 0x107   : > { %v531_v27 = vsub.f32 %v1232_v23, %v1234_v26  ;;  %v1236_v28 = vpop.eup %1235 }
 0x108   : > { %v1238_v37 = vpop.eup %1237  ;;  %v482_v63 = vmul.f32 0.6931472, %v1236_v28  ;;  %v792_v32 = vmax.f32 %v790_v11, %v791_v25 }
 0x109   : > { %v557_v16 = vmax.f32 %v531_v27, 1e-12  ;;  %v1240_v60 = vpop.eup %1239  ;;  %v763_v42 = vmul.f32 0.6931472, %v1238_v37  ;;  %vm556_vm9 = vcmp.gt.f32.partialorder %v531_v27, 1e-05 }
 0x10a   : > { %v1242_v41 = vpop.eup %1241  ;;  %v533_v29 = vsub.f32 %v1834_v24, %v482_v63  ;;  %v632_v27 = vsub.f32 0.0, %v1958_v14  ;;  %v793_v56 = vsub.f32 %v1991_v12, %v792_v32 }
 0x10b   : > { %1251 = vlog2.f32 %v557_v16  ;;  %v638_v52 = vsub.f32 %v1240_v60, %v1242_v41  ;;  %v1244_v55 = vpop.eup %1243  ;;  %v769_v10 = vsel %vm2015_vm6, %v766_v44, %v763_v42 }
 0x10c   : > { %v589_v30 = vmul.f32 0.6931472, %v1244_v55  ;;  %v553_v0 = vsub.f32 %v533_v29, %v552_v47  ;;  %v770_v5 = vadd.f32 %v769_v10, %v754_v49  ;;  %v794_v63 = vmul.f32 1.442695, %v793_v56 }
 0x10d   : > { %v664_v58 = vmax.f32 %v638_v52, 1e-12  ;;  %vm663_vm12 = vcmp.gt.f32.partialorder %v638_v52, 1e-05 }
 0x10e   : > { %v1246_v53 = vpop.eup %1245  ;;  %v640_v8 = vsub.f32 %v1845_v39, %v589_v30  ;;  %v1047_v36 = vadd.f32 -4.8481164, %v553_v0  ;;  %v771_v43 = vsel %vm755_vm8, %v1851_v48, %v770_v5 }
 0x10f   : > { %v1248_v62 = vpop.eup %1247  ;;  %1253 = vlog2.f32 %v664_v58  ;;  %v772_v26 = vmul.f32 2.0, %v771_v43 }
 0x110   : > { %v751_v24 = vsub.f32 %v1246_v53, %v1248_v62  ;;  %v1250_v3 = vpop.eup %1249  ;;  %v660_v57 = vsub.f32 %v640_v8, %v659_v6 }
 0x111   : > { %v696_v18 = vmul.f32 0.6931472, %v1250_v3 }
 0x112   : > { %v777_v7 = vmax.f32 %v751_v24, 1e-12  ;;  %v1049_v33 = vadd.f32 -4.8481164, %v660_v57  ;;  %vm776_vm15 = vcmp.gt.f32.partialorder %v751_v24, 1e-05 }
 0x113   : > { %v753_v39 = vsub.f32 %v1851_v48, %v696_v18 }
 0x114   : > { %1255 = vlog2.f32 %v777_v7 }
 0x115   : > { %v773_v34 = vsub.f32 %v753_v39, %v772_v26  ;;  %1257 = vpow2.f32 %v794_v63 }
 0x117   : > { %v1052_v9 = vadd.f32 -4.8481164, %v773_v34 }
 0x118   : > { %v1252_v19 = vpop.eup %1251 }
 0x119   : > { %v559_v23 = vmul.f32 0.6931472, %v1252_v19 }
 0x11b   : > { %v561_v61 = vsel %vm556_vm9, %v559_v23, %v1047_v36 }
 0x11c   : > { %v562_v28 = vsel %vm555_vm10, %v525_v15, %v561_v61  ;;  %v1254_v21 = vpop.eup %1253 }
 0x11d   : > { %v563_v31 = vsel %vm554_vm11, %v1919_v22, %v562_v28  ;;  %v666_v16 = vmul.f32 0.6931472, %v1254_v21 }
 0x11f   : > { %v668_v35 = vsel %vm663_vm12, %v666_v16, %v1049_v33 }
 0x120   : > { %v669_v48 = vsel %vm662_vm13, %v632_v27, %v668_v35 }
 0x121   : > { %v1256_v37 = vpop.eup %1255  ;;  %v670_v22 = vsel %vm661_vm14, %v1945_v45, %v669_v48 }
 0x122   : > { %v671_v60 = vadd.f32 %v670_v22, %v563_v31  ;;  %v779_v14 = vmul.f32 0.6931472, %v1256_v37  ;;  %v1258_v52 = vpop.eup %1257 }
 0x123   : > { %v796_v55 = vsel %vm785_vm2, %v1258_v52, 0.0 }
 0x124   : > { %v781_v40 = vsel %vm776_vm15, %v779_v14, %v1052_v9  ;;  %v797_v47 = vrot.slane %v796_v55, 4 }
 0x125   : > { %v782_v1 = vsel %vm775_vm0, %v745_v17, %v781_v40 }
 0x126   : > { %v783_v51 = vsel %vm774_vm1, %v1978_v50, %v782_v1  ;;  %v798_v50 = vadd.f32 %v797_v47, %v796_v55 }
 0x127   : > { %v784_v38 = vadd.f32 %v783_v51, %v671_v60 }
 0x128   : > { %v799_v58 = vrot.slane %v798_v50, 2 }
 0x129   : > { %v806_v41 = vadd.f32 %v784_v38, %v1991_v12 }
 0x12a   : > { %v800_v49 = vadd.f32 %v799_v58, %v798_v50 }
 0x12b   : > { %v807_v45 = vsel %vm785_vm2, %v806_v41, -inf }
 0x12c   : > { %v808_v42 = vrot.slane %v807_v45, 4  ;;  %v801_v12 = vrot.slane %v800_v49, 1 }
 0x12e   : > { %v809_v4 = vmax.f32 %v807_v45, %v808_v42  ;;  %v802_v62 = vadd.f32 %v801_v12, %v800_v49 }
 0x130   : > { %v810_v44 = vrot.slane %v809_v4, 2 }
 0x132   : > { %v811_v46 = vmax.f32 %v809_v4, %v810_v44 }
 0x134   : > { %v812_v54 = vrot.slane %v811_v46, 1 }
 0x136   : > { %v813_v29 = vmax.f32 %v811_v46, %v812_v54 }
 0x138   : > { %v814_v13 = vsub.f32 %v806_v41, %v813_v29 }
 0x13a   : > { %v815_v20 = vmul.f32 1.442695, %v814_v13 }
 0x13c   : > { %1259 = vpow2.f32 %v815_v20 }
 0x13d   : > { %1261 = vlog2.f32 %v802_v62 }
 0x149   : > { %v1260_v53 = vpop.eup %1259 }
 0x14a   : > { %v817_v10 = vsel %vm785_vm2, %v1260_v53, 0.0  ;;  %v1262_v5 = vpop.eup %1261 }
 0x14b   : > { %v818_v59 = vrot.slane %v817_v10, 4  ;;  %v804_v7 = vmul.f32 0.6931472, %v1262_v5 }
 0x14d   : > { %v819_v30 = vadd.f32 %v818_v59, %v817_v10  ;;  %v805_v8 = vadd.f32 %v804_v7, %v792_v32 }
 0x14f   : > { %v820_v0 = vrot.slane %v819_v30, 2 }
 0x151   : > { %v821_v2 = vadd.f32 %v820_v0, %v819_v30 }
 0x153   : > { %v822_v24 = vrot.slane %v821_v2, 1 }
 0x155   : > { %v823_v3 = vadd.f32 %v822_v24, %v821_v2 }
 0x157   : > { %1263 = vlog2.f32 %v823_v3 }
 0x164   : > { %v1264_v11 = vpop.eup %1263 }
 0x165   : > { %v825_v6 = vmul.f32 0.6931472, %v1264_v11 }
 0x167   : > { %v826_v36 = vadd.f32 %v825_v6, %v813_v29 }
 0x169   : > { %v827_v18 = vsub.f32 %v805_v8, %v826_v36 }
 0x16b   : > { %v829_v19 = vsel %vm828_vm3, %v827_v18, 0.0 }
 0x16c   : > { %830 = vadd.xlane.f32.xlu0 %v829_v19 }
 0x1f5   : > { %v831_v15 = vpop.xlane.xlu0 %830 }
 0x1f6   : > { %v832_v43 = vrot.slane %v831_v15, 4 }
 0x1f8   : > { %v833_v23 = vadd.f32 %v832_v43, %v831_v15 }
 0x1fa   : > { %v834_v25 = vrot.slane %v833_v23, 2 }
 0x1fc   : > { %v835_v57 = vadd.f32 %v834_v25, %v833_v23 }
 0x1fe   : > { %v836_v61 = vrot.slane %v835_v57, 1 }
 0x200   : > { %v837_v39 = vadd.f32 %v836_v61, %v835_v57 }
 0x202   : > { %1067 = vpush %v837_v39 }
 0x233   : > { %s1068_s16 = spop %1067 }
 0x234   : > { %v839_v26 = vstv %s1068_s16 }
 0x235   : > { %840 = vst [vmem:[%s422_s11] sm:$0x1] %v839_v26 }
 0x236   : > { %1418 = shalt.err (!%p1415_p11)
}
 0x237   : > { %s1419_s12 = scalar_lea.hbm %s2054_s17, 16  ;;  %s1423_s7 = scalar_lea.hbm %s2173_s3, 64 }
 0x238   : > { %p1420_p13 = scmp.ne.s32.totalorder %s2054_s17, %s1419_s12  ;;  %p1424_p5 = scmp.lt.s32.totalorder %s2054_s17, %s2173_s3 }
 0x239   : > { %p1425_p6 = scmp.lt.s32.totalorder %s1423_s7, %s1419_s12 }
 0x23a   : > { %p1421_p3 = pnand %p1420_p13, %p1622_p9 }
 0x23b   : > { %p1426_p8 = por %p1425_p6, %p1424_p5 }
 0x23c   : > { %p1422_p4 = pneg %p1421_p3 }
 0x23e   : > { %p1427_p0 = pnand %p1426_p8, %p1422_p4 }
 0x240   : > { %1430 = shalt.err (!%p1427_p0)
}
 0x241   : > { %1079 = dma.vmem_to_hbm [thread:$0]  (%p1622_p9), %s857_s18, 16, %s2054_s17, %s842_s13  }
 0x242 PF: > { %s2174_s28 = sld [smem:[#allocation22_spill]] }
 0x243   : > { %s2175_s8 = sld [smem:[#allocation16_spill]] }
 0x248   : > { %p1102_p1 = scmp.ge.s32.totalorder %s2174_s28, 2 }
 0x249   : > { %s868_s26 = sand.u32 1, %s2175_s8  }
 0x24a   : > { %p1098_p2 = pnand %p1102_p1, %p1628_p12  ;;  %s869_s5 = scalar_lea.sflag [#allocation4], %s868_s26 }
 0x24c   : > { %p1099_p7 = pneg %p1098_p2 }
 0x24e   : > { %1476 = dma.done.wait (%p1099_p7), %s869_s5, 16  }
 0x24f   : > { %1478 = vsyncadd (%p1099_p7), %s869_s5, 4294967280  ;;  %s27_s25 = sadd.s32 1, %s2174_s28   ;;  %s2177_s15 = sld [smem:[#allocation17_spill]] }
 0x250   : > { %p24_p10 = scmp.ge.s32.totalorder %s27_s25, 6   ;;  %s2178_s20 = sld [smem:[#allocation28_spill]] }
 0x251   : > { %s2179_s21 = sld [smem:[#allocation20_spill]]  ;;  %s2183_s18 = smov %s1485_s19 }
 0x252   : > { %s2180_s22 = sld [smem:[#allocation21_spill]]  ;;  %26 = sbr.rel (!%p24_p10) target bundleno = 15 (0xf), region = 133 }
 0x253   : > { %s2181_s23 = sld [smem:[#allocation24_spill]] }
 0x254   : > { %s2182_s24 = sld [smem:[#allocation25_spill]] }
 0x255   : > { %s2184_s19 = smov %s2177_s15 }
 0x257   :  { %873 = vsyncpa [#allocation3], 1 }
 0x258   :  { %875 = vsyncpa [#allocation3 + $0x1], 1 }
 0x259   :  { %876 = vsyncpa [#allocation6], 1 }
 0x25a   :  { %878 = vsyncpa [#allocation6 + $0x1], 1 }
 0x25b   :  { %879 = vsyncpa [#allocation9], 1 }
 0x25c   :  { %881 = vsyncpa [#allocation9 + $0x1], 1 }
 0x25d   :  { %882 = vsyncpa [#allocation4], 1 }
 0x25e   :  { %884 = vsyncpa [#allocation4 + $0x1], 1 }

</bundles_post_ra>
